<compile_context>
chip_gen: v7x
topology: tpu7x:2x2x1
jax: 0.10.0
libtpu: 0.0.40
codegen_flags: <defaults>
</compile_context>

<pallas_src>
import math
import numpy as np
import jax
import jax.numpy as jnp
from jax import lax
from jax.experimental import pallas as pl
from jax.experimental.pallas import tpu as pltpu

# ----- static configuration (small shapes consistent with the module) -----
BATCH = 2
INPUT_SIZE = 16
HIDDEN = 32
NUM_LAYERS = 2
SEQ_LEN = 8
LANE = 128
DTYPE = jnp.float32


def _lstm_seq_kernel(x_ref, w_ref, b_ref, wout_ref, bout_ref, h0_ref, c0_ref,
                     y_ref, hout_ref, cout_ref, gx_sc, u_sc):
    """One invocation == whole sequence. Layer-major: batched input-side gate
    matmul per layer, then a serial timestep loop with register-carried (h, c)."""
    H, B = HIDDEN, BATCH

    u = x_ref[...]                                           # (T*B, H) layer-0 input
    for l in range(NUM_LAYERS):
        # Batched (all timesteps) input-side gates + fused bias — off the recurrence.
        gx_sc[...] = (jnp.dot(u, w_ref[l, 0], preferred_element_type=jnp.float32)
                      + b_ref[l])                            # (T*B, 4H)
        whh = w_ref[l, 1]                                    # (H, 4H), loaded once per layer
        h = h0_ref[l]                                        # (B, H) register-carried
        c = c0_ref[l]
        for t in range(SEQ_LEN):                             # static unroll, serial chain
            gates = (gx_sc[pl.ds(t * B, B), :]
                     + jnp.dot(h, whh, preferred_element_type=jnp.float32))  # (B, 4H)
            # whole-tile sigmoid (EUP); the g-gate lanes of sg are unused (minor waste,
            # they share the same vreg so there is no cheaper masked alternative).
            sg = jax.nn.sigmoid(gates)
            i_g = sg[:, 0 * H:1 * H]
            f_g = sg[:, 1 * H:2 * H]
            o_g = sg[:, 3 * H:4 * H]
            g_g = jnp.tanh(gates[:, 2 * H:3 * H])
            c = f_g * c + i_g * g_g
            h = o_g * jnp.tanh(c)
            u_sc[pl.ds(t * B, B), :] = h                     # collect sequence for next layer
        hout_ref[l] = h
        cout_ref[l] = c
        u = u_sc[...]                                        # (T*B, H) next layer's input

    # One batched output projection over all timesteps -> lane-dense (T*B, 128) store.
    y_ref[...] = (jnp.dot(u, wout_ref[...], preferred_element_type=jnp.float32)
                  + bout_ref[...])


def precompute_kernel_params(params):
    """Host-side (once per model): transpose, fold in_layer into layer 0 (at
    HIGHEST precision), fuse biases, stack per-layer weights, pad out_layer to
    128 lanes."""
    H, I, L = HIDDEN, INPUT_SIZE, NUM_LAYERS
    assert I <= H, "precompute assumes input_size <= hidden_size"
    hp = lax.Precision.HIGHEST
    w_in, b_in = params["w_in"], params["b_in"]            # (H, I), (1, H)
    w_ih, w_hh = params["w_ih"], params["w_hh"]            # (L, 4H, H)
    b_ih, b_hh = params["b_ih"], params["b_hh"]            # (L, 1, 4H)
    w_out, b_out = params["w_out"], params["b_out"]        # (I, H), (1, I)

    # layer-0 input weight folded with in_layer, transposed: (I, 4H) -> pad to (H, 4H)
    w0x_t = jnp.pad(jnp.dot(w_in.T, w_ih[0].T, precision=hp), ((0, H - I), (0, 0)))
    in_ws = [w0x_t] + [w_ih[l].T for l in range(1, L)]     # each (H, 4H)
    # stacked per-layer [input, recurrent] weights: (L, 2, H, 4H) -> single DMA
    w_stack = jnp.stack([jnp.stack([in_ws[l], w_hh[l].T]) for l in range(L)])

    # fused biases; in_layer bias folded into layer 0: (L, 1, 4H)
    b = b_ih + b_hh
    b = b.at[0].add(jnp.dot(b_in, w_ih[0].T, precision=hp))

    # out_layer pre-transposed + zero-padded to a lane-dense (H, 128) tile
    wout_t = jnp.pad(w_out.T, ((0, 0), (0, LANE - I)))     # (H, 128)
    bout = jnp.pad(b_out, ((0, 0), (0, LANE - I)))         # (1, 128)
    return {"w_stack": w_stack, "b": b, "wout_t": wout_t, "bout": bout}


def simple_lstm_forward_seq(x_seq, kparams, h0, c0):
    """x_seq: (T, B, I); h0/c0: (L, B, H). Returns (y_seq (T,B,I), h_out, c_out)."""
    T, B, I = x_seq.shape
    L, _, H = h0.shape

    # zero-pad input I -> H once and flatten time into rows: (T*B, H)
    x2d = jnp.pad(x_seq, ((0, 0), (0, 0), (0, H - I))).reshape(T * B, H)

    def const_spec(shape):
        nd = len(shape)
        return pl.BlockSpec(shape, lambda i, _nd=nd: (0,) * _nd)

    in_specs = [
        const_spec(x2d.shape),
        const_spec(kparams["w_stack"].shape),
        const_spec(kparams["b"].shape),
        const_spec(kparams["wout_t"].shape),
        const_spec(kparams["bout"].shape),
        const_spec(h0.shape),
        const_spec(c0.shape),
    ]
    out_shape = (
        jax.ShapeDtypeStruct((T * B, LANE), DTYPE),         # y (lane-dense, sliced outside)
        jax.ShapeDtypeStruct((L, B, H), DTYPE),             # final h states
        jax.ShapeDtypeStruct((L, B, H), DTYPE),             # final c states
    )
    out_specs = (
        const_spec((T * B, LANE)),
        const_spec((L, B, H)),
        const_spec((L, B, H)),
    )
    y_pad, h_out, c_out = pl.pallas_call(
        _lstm_seq_kernel,
        grid=(1,),                                          # single invocation, T unrolled inside
        out_shape=out_shape,
        in_specs=in_specs,
        out_specs=out_specs,
        scratch_shapes=[pltpu.VMEM((T * B, 4 * H), jnp.float32),   # batched gate buffer
                        pltpu.VMEM((T * B, H), jnp.float32)],      # full-sequence activations
        compiler_params=pltpu.CompilerParams(
            dimension_semantics=("arbitrary",)),
    )(x2d, kparams["w_stack"], kparams["b"], kparams["wout_t"], kparams["bout"], h0, c0)
    y = y_pad.reshape(T, B, LANE)[:, :, :I]
    return y, h_out, c_out


def init_params(key, input_size, hidden_size, num_layers):
    """Deterministic PyTorch-style uniform(-1/sqrt(fan), 1/sqrt(fan)) init."""
    ks = jax.random.split(key, 8)
    kin = 1.0 / math.sqrt(input_size)
    kh = 1.0 / math.sqrt(hidden_size)
    u = lambda k, shp, b: jax.random.uniform(k, shp, DTYPE, -b, b)
    return {
        "w_in": u(ks[0], (hidden_size, input_size), kin),
        "b_in": u(ks[1], (1, hidden_size), kin),
        "w_ih": u(ks[2], (num_layers, 4 * hidden_size, hidden_size), kh),
        "w_hh": u(ks[3], (num_layers, 4 * hidden_size, hidden_size), kh),
        "b_ih": u(ks[4], (num_layers, 1, 4 * hidden_size), kh),
        "b_hh": u(ks[5], (num_layers, 1, 4 * hidden_size), kh),
        "w_out": u(ks[6], (input_size, hidden_size), kh),
        "b_out": u(ks[7], (1, input_size), kh),
    }


def reference_step(x, params, h, c):
    """Pure-JAX mirror of SimpleLSTM.forward (eval mode), PyTorch weight layout."""
    H = HIDDEN
    hp = lax.Precision.HIGHEST
    h_out = jnp.dot(x, params["w_in"].T, precision=hp) + params["b_in"]
    hs, cs = [], []
    for l in range(NUM_LAYERS):
        gates = (jnp.dot(h_out, params["w_ih"][l].T, precision=hp) + params["b_ih"][l]
                 + jnp.dot(h[l], params["w_hh"][l].T, precision=hp) + params["b_hh"][l])
        i_g = jax.nn.sigmoid(gates[:, 0 * H:1 * H])
        f_g = jax.nn.sigmoid(gates[:, 1 * H:2 * H])
        g_g = jnp.tanh(gates[:, 2 * H:3 * H])
        o_g = jax.nn.sigmoid(gates[:, 3 * H:4 * H])
        c_new = f_g * c[l] + i_g * g_g
        h_new = o_g * jnp.tanh(c_new)
        hs.append(h_new)
        cs.append(c_new)
        h_out = h_new
    y = jnp.dot(h_out, params["w_out"].T, precision=hp) + params["b_out"]
    return y, jnp.stack(hs), jnp.stack(cs)


def reference_forward_seq(x_seq, params, h0, c0):
    h, c = h0, c0
    ys = []
    for t in range(x_seq.shape[0]):
        y, h, c = reference_step(x_seq[t], params, h, c)
        ys.append(y)
    return jnp.stack(ys), h, c


if __name__ == "__main__":
    key = jax.random.PRNGKey(0)
    k_param, k_x = jax.random.split(key)

    params = init_params(k_param, INPUT_SIZE, HIDDEN, NUM_LAYERS)
    kparams = precompute_kernel_params(params)

    x_seq = jax.random.normal(k_x, (SEQ_LEN, BATCH, INPUT_SIZE), DTYPE)
    # hx/cx default to zeros in the module; carried across the T unrolled steps
    h0 = jnp.zeros((NUM_LAYERS, BATCH, HIDDEN), DTYPE)
    c0 = jnp.zeros((NUM_LAYERS, BATCH, HIDDEN), DTYPE)

    y, h_out, c_out = simple_lstm_forward_seq(x_seq, kparams, h0, c0)
    jax.block_until_ready((y, h_out, c_out))

    y_ref, h_ref, c_ref = reference_forward_seq(x_seq, params, h0, c0)
    np.testing.assert_allclose(np.asarray(y), np.asarray(y_ref), rtol=1e-4, atol=1e-4)
    np.testing.assert_allclose(np.asarray(h_out), np.asarray(h_ref), rtol=1e-4, atol=1e-4)
    np.testing.assert_allclose(np.asarray(c_out), np.asarray(c_ref), rtol=1e-4, atol=1e-4)

    print("KERNEL_OK")
</pallas_src>

<mosaic_0001>
module attributes {stable_mosaic.version = 11 : i64} {
  func.func @_lstm_seq_kernel(%arg0: i32, %arg1: memref<16x32xf32, #tpu.memory_space<vmem>>, %arg2: memref<2x2x32x128xf32, #tpu.memory_space<vmem>>, %arg3: memref<2x1x128xf32, #tpu.memory_space<vmem>>, %arg4: memref<32x128xf32, #tpu.memory_space<vmem>>, %arg5: memref<1x128xf32, #tpu.memory_space<vmem>>, %arg6: memref<2x2x32xf32, #tpu.memory_space<vmem>>, %arg7: memref<2x2x32xf32, #tpu.memory_space<vmem>>, %arg8: memref<16x128xf32, #tpu.memory_space<vmem>>, %arg9: memref<2x2x32xf32, #tpu.memory_space<vmem>>, %arg10: memref<2x2x32xf32, #tpu.memory_space<vmem>>, %arg11: memref<16x128xf32, #tpu.memory_space<vmem>>, %arg12: memref<16x32xf32, #tpu.memory_space<vmem>>) attributes {dimension_semantics = [#tpu.dimension_semantics<arbitrary>], iteration_bounds = array<i64: 1>, scalar_prefetch = 0 : i64, scratch_operands = 2 : i64, tpu.core_type = #tpu.core_type<tc>, window_params = [{pipeline_mode = #tpu.pipeline_mode<synchronous>, transform_indices = @transform_0, window_bounds = array<i64: 16, 32>}, {pipeline_mode = #tpu.pipeline_mode<synchronous>, transform_indices = @transform_1, window_bounds = array<i64: 2, 2, 32, 128>}, {pipeline_mode = #tpu.pipeline_mode<synchronous>, transform_indices = @transform_2, window_bounds = array<i64: 2, 1, 128>}, {pipeline_mode = #tpu.pipeline_mode<synchronous>, transform_indices = @transform_3, window_bounds = array<i64: 32, 128>}, {pipeline_mode = #tpu.pipeline_mode<synchronous>, transform_indices = @transform_4, window_bounds = array<i64: 1, 128>}, {pipeline_mode = #tpu.pipeline_mode<synchronous>, transform_indices = @transform_5, window_bounds = array<i64: 2, 2, 32>}, {pipeline_mode = #tpu.pipeline_mode<synchronous>, transform_indices = @transform_6, window_bounds = array<i64: 2, 2, 32>}, {pipeline_mode = #tpu.pipeline_mode<synchronous>, transform_indices = @transform_7, window_bounds = array<i64: 16, 128>}, {pipeline_mode = #tpu.pipeline_mode<synchronous>, transform_indices = @transform_8, window_bounds = array<i64: 2, 2, 32>}, {pipeline_mode = #tpu.pipeline_mode<synchronous>, transform_indices = @transform_9, window_bounds = array<i64: 2, 2, 32>}]} {
    %c0 = arith.constant 0 : index
    %c0_0 = arith.constant 0 : index
    %0 = vector.load %arg1[%c0, %c0_0] : memref<16x32xf32, #tpu.memory_space<vmem>>, vector<16x32xf32>
    %c0_1 = arith.constant 0 : index
    %c0_2 = arith.constant 0 : index
    %c0_3 = arith.constant 0 : index
    %c0_4 = arith.constant 0 : index
    %1 = vector.load %arg2[%c0_1, %c0_2, %c0_3, %c0_4] : memref<2x2x32x128xf32, #tpu.memory_space<vmem>>, vector<1x1x32x128xf32>
    %2 = vector.shape_cast %1 : vector<1x1x32x128xf32> to vector<32x128xf32>
    %cst = arith.constant dense<0.000000e+00> : vector<16x128xf32>
    %3 = tpu.matmul %0, %2, %cst {dimension_numbers = #tpu.dot_dimension_numbers<[1], [0], [0], [1], [0, 0, 1, 1], [], []>} : vector<16x32xf32>, vector<32x128xf32>, vector<16x128xf32> -> vector<16x128xf32>
    %c0_5 = arith.constant 0 : index
    %c0_6 = arith.constant 0 : index
    %c0_7 = arith.constant 0 : index
    %4 = vector.load %arg3[%c0_5, %c0_6, %c0_7] : memref<2x1x128xf32, #tpu.memory_space<vmem>>, vector<1x1x128xf32>
    %5 = vector.shape_cast %4 : vector<1x1x128xf32> to vector<1x128xf32>
    %6 = vector.broadcast %5 : vector<1x128xf32> to vector<16x128xf32>
    %7 = arith.addf %3, %6 : vector<16x128xf32>
    %c0_8 = arith.constant 0 : index
    %c0_9 = arith.constant 0 : index
    %8 = vector.load %arg11[%c0_8, %c0_9] : memref<16x128xf32, #tpu.memory_space<vmem>>, vector<16x128xf32>
    tpu.vector_store %arg11[%c0_8, %c0_9], %7 {strides = array<i32>} : memref<16x128xf32, #tpu.memory_space<vmem>>, vector<16x128xf32>,
    %c0_10 = arith.constant 0 : index
    %c1 = arith.constant 1 : index
    %c0_11 = arith.constant 0 : index
    %c0_12 = arith.constant 0 : index
    %9 = vector.load %arg2[%c0_10, %c1, %c0_11, %c0_12] : memref<2x2x32x128xf32, #tpu.memory_space<vmem>>, vector<1x1x32x128xf32>
    %10 = vector.shape_cast %9 : vector<1x1x32x128xf32> to vector<32x128xf32>
    %c0_13 = arith.constant 0 : index
    %c0_14 = arith.constant 0 : index
    %c0_15 = arith.constant 0 : index
    %11 = vector.load %arg6[%c0_13, %c0_14, %c0_15] : memref<2x2x32xf32, #tpu.memory_space<vmem>>, vector<1x2x32xf32>
    %12 = vector.shape_cast %11 : vector<1x2x32xf32> to vector<2x32xf32>
    %c0_16 = arith.constant 0 : index
    %c0_17 = arith.constant 0 : index
    %c0_18 = arith.constant 0 : index
    %13 = vector.load %arg7[%c0_16, %c0_17, %c0_18] : memref<2x2x32xf32, #tpu.memory_space<vmem>>, vector<1x2x32xf32>
    %14 = vector.shape_cast %13 : vector<1x2x32xf32> to vector<2x32xf32>
    %c0_19 = arith.constant 0 : index
    %c0_20 = arith.constant 0 : index
    %15 = vector.load %arg11[%c0_19, %c0_20] : memref<16x128xf32, #tpu.memory_space<vmem>>, vector<2x128xf32>
    %cst_21 = arith.constant dense<0.000000e+00> : vector<2x128xf32>
    %16 = tpu.matmul %12, %10, %cst_21 {dimension_numbers = #tpu.dot_dimension_numbers<[1], [0], [0], [1], [0, 0, 1, 1], [], []>} : vector<2x32xf32>, vector<32x128xf32>, vector<2x128xf32> -> vector<2x128xf32>
    %17 = arith.addf %15, %16 : vector<2x128xf32>
    %18 = arith.negf %17 : vector<2x128xf32>
    %19 = math.exp %18 : vector<2x128xf32>
    %cst_22 = arith.constant 1.000000e+00 : f32
    %20 = vector.broadcast %cst_22 : f32 to vector<2x128xf32>
    %21 = arith.addf %20, %19 : vector<2x128xf32>
    %22 = arith.divf %20, %21 : vector<2x128xf32>
    %23 = vector.extract_strided_slice %22 {offsets = [0, 0], sizes = [2, 32], strides = [1, 1]} : vector<2x128xf32> to vector<2x32xf32>
    %24 = vector.extract_strided_slice %22 {offsets = [0, 32], sizes = [2, 32], strides = [1, 1]} : vector<2x128xf32> to vector<2x32xf32>
    %25 = vector.extract_strided_slice %22 {offsets = [0, 96], sizes = [2, 32], strides = [1, 1]} : vector<2x128xf32> to vector<2x32xf32>
    %26 = vector.extract_strided_slice %17 {offsets = [0, 64], sizes = [2, 32], strides = [1, 1]} : vector<2x128xf32> to vector<2x32xf32>
    %27 = math.tanh %26 : vector<2x32xf32>
    %28 = arith.mulf %24, %14 : vector<2x32xf32>
    %29 = arith.mulf %23, %27 : vector<2x32xf32>
    %30 = arith.addf %28, %29 : vector<2x32xf32>
    %31 = math.tanh %30 : vector<2x32xf32>
    %32 = arith.mulf %25, %31 : vector<2x32xf32>
    %c0_23 = arith.constant 0 : index
    %c0_24 = arith.constant 0 : index
    %33 = vector.load %arg12[%c0_23, %c0_24] : memref<16x32xf32, #tpu.memory_space<vmem>>, vector<2x32xf32>
    tpu.vector_store %arg12[%c0_23, %c0_24], %32 {strides = array<i32>} : memref<16x32xf32, #tpu.memory_space<vmem>>, vector<2x32xf32>,
    %c2 = arith.constant 2 : index
    %c0_25 = arith.constant 0 : index
    %34 = vector.load %arg11[%c2, %c0_25] : memref<16x128xf32, #tpu.memory_space<vmem>>, vector<2x128xf32>
    %cst_26 = arith.constant dense<0.000000e+00> : vector<2x128xf32>
    %35 = tpu.matmul %32, %10, %cst_26 {dimension_numbers = #tpu.dot_dimension_numbers<[1], [0], [0], [1], [0, 0, 1, 1], [], []>} : vector<2x32xf32>, vector<32x128xf32>, vector<2x128xf32> -> vector<2x128xf32>
    %36 = arith.addf %34, %35 : vector<2x128xf32>
    %37 = arith.negf %36 : vector<2x128xf32>
    %38 = math.exp %37 : vector<2x128xf32>
    %cst_27 = arith.constant 1.000000e+00 : f32
    %39 = vector.broadcast %cst_27 : f32 to vector<2x128xf32>
    %40 = arith.addf %39, %38 : vector<2x128xf32>
    %41 = arith.divf %39, %40 : vector<2x128xf32>
    %42 = vector.extract_strided_slice %41 {offsets = [0, 0], sizes = [2, 32], strides = [1, 1]} : vector<2x128xf32> to vector<2x32xf32>
    %43 = vector.extract_strided_slice %41 {offsets = [0, 32], sizes = [2, 32], strides = [1, 1]} : vector<2x128xf32> to vector<2x32xf32>
    %44 = vector.extract_strided_slice %41 {offsets = [0, 96], sizes = [2, 32], strides = [1, 1]} : vector<2x128xf32> to vector<2x32xf32>
    %45 = vector.extract_strided_slice %36 {offsets = [0, 64], sizes = [2, 32], strides = [1, 1]} : vector<2x128xf32> to vector<2x32xf32>
    %46 = math.tanh %45 : vector<2x32xf32>
    %47 = arith.mulf %43, %30 : vector<2x32xf32>
    %48 = arith.mulf %42, %46 : vector<2x32xf32>
    %49 = arith.addf %47, %48 : vector<2x32xf32>
    %50 = math.tanh %49 : vector<2x32xf32>
    %51 = arith.mulf %44, %50 : vector<2x32xf32>
    %c2_28 = arith.constant 2 : index
    %c0_29 = arith.constant 0 : index
    %52 = vector.load %arg12[%c2_28, %c0_29] : memref<16x32xf32, #tpu.memory_space<vmem>>, vector<2x32xf32>
    tpu.vector_store %arg12[%c2_28, %c0_29], %51 {strides = array<i32>} : memref<16x32xf32, #tpu.memory_space<vmem>>, vector<2x32xf32>,
    %c4 = arith.constant 4 : index
    %c0_30 = arith.constant 0 : index
    %53 = vector.load %arg11[%c4, %c0_30] : memref<16x128xf32, #tpu.memory_space<vmem>>, vector<2x128xf32>
    %cst_31 = arith.constant dense<0.000000e+00> : vector<2x128xf32>
    %54 = tpu.matmul %51, %10, %cst_31 {dimension_numbers = #tpu.dot_dimension_numbers<[1], [0], [0], [1], [0, 0, 1, 1], [], []>} : vector<2x32xf32>, vector<32x128xf32>, vector<2x128xf32> -> vector<2x128xf32>
    %55 = arith.addf %53, %54 : vector<2x128xf32>
    %56 = arith.negf %55 : vector<2x128xf32>
    %57 = math.exp %56 : vector<2x128xf32>
    %cst_32 = arith.constant 1.000000e+00 : f32
    %58 = vector.broadcast %cst_32 : f32 to vector<2x128xf32>
    %59 = arith.addf %58, %57 : vector<2x128xf32>
    %60 = arith.divf %58, %59 : vector<2x128xf32>
    %61 = vector.extract_strided_slice %60 {offsets = [0, 0], sizes = [2, 32], strides = [1, 1]} : vector<2x128xf32> to vector<2x32xf32>
    %62 = vector.extract_strided_slice %60 {offsets = [0, 32], sizes = [2, 32], strides = [1, 1]} : vector<2x128xf32> to vector<2x32xf32>
    %63 = vector.extract_strided_slice %60 {offsets = [0, 96], sizes = [2, 32], strides = [1, 1]} : vector<2x128xf32> to vector<2x32xf32>
    %64 = vector.extract_strided_slice %55 {offsets = [0, 64], sizes = [2, 32], strides = [1, 1]} : vector<2x128xf32> to vector<2x32xf32>
    %65 = math.tanh %64 : vector<2x32xf32>
    %66 = arith.mulf %62, %49 : vector<2x32xf32>
    %67 = arith.mulf %61, %65 : vector<2x32xf32>
    %68 = arith.addf %66, %67 : vector<2x32xf32>
    %69 = math.tanh %68 : vector<2x32xf32>
    %70 = arith.mulf %63, %69 : vector<2x32xf32>
    %c4_33 = arith.constant 4 : index
    %c0_34 = arith.constant 0 : index
    %71 = vector.load %arg12[%c4_33, %c0_34] : memref<16x32xf32, #tpu.memory_space<vmem>>, vector<2x32xf32>
    tpu.vector_store %arg12[%c4_33, %c0_34], %70 {strides = array<i32>} : memref<16x32xf32, #tpu.memory_space<vmem>>, vector<2x32xf32>,
    %c6 = arith.constant 6 : index
    %c0_35 = arith.constant 0 : index
    %72 = vector.load %arg11[%c6, %c0_35] : memref<16x128xf32, #tpu.memory_space<vmem>>, vector<2x128xf32>
    %cst_36 = arith.constant dense<0.000000e+00> : vector<2x128xf32>
    %73 = tpu.matmul %70, %10, %cst_36 {dimension_numbers = #tpu.dot_dimension_numbers<[1], [0], [0], [1], [0, 0, 1, 1], [], []>} : vector<2x32xf32>, vector<32x128xf32>, vector<2x128xf32> -> vector<2x128xf32>
    %74 = arith.addf %72, %73 : vector<2x128xf32>
    %75 = arith.negf %74 : vector<2x128xf32>
    %76 = math.exp %75 : vector<2x128xf32>
    %cst_37 = arith.constant 1.000000e+00 : f32
    %77 = vector.broadcast %cst_37 : f32 to vector<2x128xf32>
    %78 = arith.addf %77, %76 : vector<2x128xf32>
    %79 = arith.divf %77, %78 : vector<2x128xf32>
    %80 = vector.extract_strided_slice %79 {offsets = [0, 0], sizes = [2, 32], strides = [1, 1]} : vector<2x128xf32> to vector<2x32xf32>
    %81 = vector.extract_strided_slice %79 {offsets = [0, 32], sizes = [2, 32], strides = [1, 1]} : vector<2x128xf32> to vector<2x32xf32>
    %82 = vector.extract_strided_slice %79 {offsets = [0, 96], sizes = [2, 32], strides = [1, 1]} : vector<2x128xf32> to vector<2x32xf32>
    %83 = vector.extract_strided_slice %74 {offsets = [0, 64], sizes = [2, 32], strides = [1, 1]} : vector<2x128xf32> to vector<2x32xf32>
    %84 = math.tanh %83 : vector<2x32xf32>
    %85 = arith.mulf %81, %68 : vector<2x32xf32>
    %86 = arith.mulf %80, %84 : vector<2x32xf32>
    %87 = arith.addf %85, %86 : vector<2x32xf32>
    %88 = math.tanh %87 : vector<2x32xf32>
    %89 = arith.mulf %82, %88 : vector<2x32xf32>
    %c6_38 = arith.constant 6 : index
    %c0_39 = arith.constant 0 : index
    %90 = vector.load %arg12[%c6_38, %c0_39] : memref<16x32xf32, #tpu.memory_space<vmem>>, vector<2x32xf32>
    tpu.vector_store %arg12[%c6_38, %c0_39], %89 {strides = array<i32>} : memref<16x32xf32, #tpu.memory_space<vmem>>, vector<2x32xf32>,
    %c8 = arith.constant 8 : index
    %c0_40 = arith.constant 0 : index
    %91 = vector.load %arg11[%c8, %c0_40] : memref<16x128xf32, #tpu.memory_space<vmem>>, vector<2x128xf32>
    %cst_41 = arith.constant dense<0.000000e+00> : vector<2x128xf32>
    %92 = tpu.matmul %89, %10, %cst_41 {dimension_numbers = #tpu.dot_dimension_numbers<[1], [0], [0], [1], [0, 0, 1, 1], [], []>} : vector<2x32xf32>, vector<32x128xf32>, vector<2x128xf32> -> vector<2x128xf32>
    %93 = arith.addf %91, %92 : vector<2x128xf32>
    %94 = arith.negf %93 : vector<2x128xf32>
    %95 = math.exp %94 : vector<2x128xf32>
    %cst_42 = arith.constant 1.000000e+00 : f32
    %96 = vector.broadcast %cst_42 : f32 to vector<2x128xf32>
    %97 = arith.addf %96, %95 : vector<2x128xf32>
    %98 = arith.divf %96, %97 : vector<2x128xf32>
    %99 = vector.extract_strided_slice %98 {offsets = [0, 0], sizes = [2, 32], strides = [1, 1]} : vector<2x128xf32> to vector<2x32xf32>
    %100 = vector.extract_strided_slice %98 {offsets = [0, 32], sizes = [2, 32], strides = [1, 1]} : vector<2x128xf32> to vector<2x32xf32>
    %101 = vector.extract_strided_slice %98 {offsets = [0, 96], sizes = [2, 32], strides = [1, 1]} : vector<2x128xf32> to vector<2x32xf32>
    %102 = vector.extract_strided_slice %93 {offsets = [0, 64], sizes = [2, 32], strides = [1, 1]} : vector<2x128xf32> to vector<2x32xf32>
    %103 = math.tanh %102 : vector<2x32xf32>
    %104 = arith.mulf %100, %87 : vector<2x32xf32>
    %105 = arith.mulf %99, %103 : vector<2x32xf32>
    %106 = arith.addf %104, %105 : vector<2x32xf32>
    %107 = math.tanh %106 : vector<2x32xf32>
    %108 = arith.mulf %101, %107 : vector<2x32xf32>
    %c8_43 = arith.constant 8 : index
    %c0_44 = arith.constant 0 : index
    %109 = vector.load %arg12[%c8_43, %c0_44] : memref<16x32xf32, #tpu.memory_space<vmem>>, vector<2x32xf32>
    tpu.vector_store %arg12[%c8_43, %c0_44], %108 {strides = array<i32>} : memref<16x32xf32, #tpu.memory_space<vmem>>, vector<2x32xf32>,
    %c10 = arith.constant 10 : index
    %c0_45 = arith.constant 0 : index
    %110 = vector.load %arg11[%c10, %c0_45] : memref<16x128xf32, #tpu.memory_space<vmem>>, vector<2x128xf32>
    %cst_46 = arith.constant dense<0.000000e+00> : vector<2x128xf32>
    %111 = tpu.matmul %108, %10, %cst_46 {dimension_numbers = #tpu.dot_dimension_numbers<[1], [0], [0], [1], [0, 0, 1, 1], [], []>} : vector<2x32xf32>, vector<32x128xf32>, vector<2x128xf32> -> vector<2x128xf32>
    %112 = arith.addf %110, %111 : vector<2x128xf32>
    %113 = arith.negf %112 : vector<2x128xf32>
    %114 = math.exp %113 : vector<2x128xf32>
    %cst_47 = arith.constant 1.000000e+00 : f32
    %115 = vector.broadcast %cst_47 : f32 to vector<2x128xf32>
    %116 = arith.addf %115, %114 : vector<2x128xf32>
    %117 = arith.divf %115, %116 : vector<2x128xf32>
    %118 = vector.extract_strided_slice %117 {offsets = [0, 0], sizes = [2, 32], strides = [1, 1]} : vector<2x128xf32> to vector<2x32xf32>
    %119 = vector.extract_strided_slice %117 {offsets = [0, 32], sizes = [2, 32], strides = [1, 1]} : vector<2x128xf32> to vector<2x32xf32>
    %120 = vector.extract_strided_slice %117 {offsets = [0, 96], sizes = [2, 32], strides = [1, 1]} : vector<2x128xf32> to vector<2x32xf32>
    %121 = vector.extract_strided_slice %112 {offsets = [0, 64], sizes = [2, 32], strides = [1, 1]} : vector<2x128xf32> to vector<2x32xf32>
    %122 = math.tanh %121 : vector<2x32xf32>
    %123 = arith.mulf %119, %106 : vector<2x32xf32>
    %124 = arith.mulf %118, %122 : vector<2x32xf32>
    %125 = arith.addf %123, %124 : vector<2x32xf32>
    %126 = math.tanh %125 : vector<2x32xf32>
    %127 = arith.mulf %120, %126 : vector<2x32xf32>
    %c10_48 = arith.constant 10 : index
    %c0_49 = arith.constant 0 : index
    %128 = vector.load %arg12[%c10_48, %c0_49] : memref<16x32xf32, #tpu.memory_space<vmem>>, vector<2x32xf32>
    tpu.vector_store %arg12[%c10_48, %c0_49], %127 {strides = array<i32>} : memref<16x32xf32, #tpu.memory_space<vmem>>, vector<2x32xf32>,
    %c12 = arith.constant 12 : index
    %c0_50 = arith.constant 0 : index
    %129 = vector.load %arg11[%c12, %c0_50] : memref<16x128xf32, #tpu.memory_space<vmem>>, vector<2x128xf32>
    %cst_51 = arith.constant dense<0.000000e+00> : vector<2x128xf32>
    %130 = tpu.matmul %127, %10, %cst_51 {dimension_numbers = #tpu.dot_dimension_numbers<[1], [0], [0], [1], [0, 0, 1, 1], [], []>} : vector<2x32xf32>, vector<32x128xf32>, vector<2x128xf32> -> vector<2x128xf32>
    %131 = arith.addf %129, %130 : vector<2x128xf32>
    %132 = arith.negf %131 : vector<2x128xf32>
    %133 = math.exp %132 : vector<2x128xf32>
    %cst_52 = arith.constant 1.000000e+00 : f32
    %134 = vector.broadcast %cst_52 : f32 to vector<2x128xf32>
    %135 = arith.addf %134, %133 : vector<2x128xf32>
    %136 = arith.divf %134, %135 : vector<2x128xf32>
    %137 = vector.extract_strided_slice %136 {offsets = [0, 0], sizes = [2, 32], strides = [1, 1]} : vector<2x128xf32> to vector<2x32xf32>
    %138 = vector.extract_strided_slice %136 {offsets = [0, 32], sizes = [2, 32], strides = [1, 1]} : vector<2x128xf32> to vector<2x32xf32>
    %139 = vector.extract_strided_slice %136 {offsets = [0, 96], sizes = [2, 32], strides = [1, 1]} : vector<2x128xf32> to vector<2x32xf32>
    %140 = vector.extract_strided_slice %131 {offsets = [0, 64], sizes = [2, 32], strides = [1, 1]} : vector<2x128xf32> to vector<2x32xf32>
    %141 = math.tanh %140 : vector<2x32xf32>
    %142 = arith.mulf %138, %125 : vector<2x32xf32>
    %143 = arith.mulf %137, %141 : vector<2x32xf32>
    %144 = arith.addf %142, %143 : vector<2x32xf32>
    %145 = math.tanh %144 : vector<2x32xf32>
    %146 = arith.mulf %139, %145 : vector<2x32xf32>
    %c12_53 = arith.constant 12 : index
    %c0_54 = arith.constant 0 : index
    %147 = vector.load %arg12[%c12_53, %c0_54] : memref<16x32xf32, #tpu.memory_space<vmem>>, vector<2x32xf32>
    tpu.vector_store %arg12[%c12_53, %c0_54], %146 {strides = array<i32>} : memref<16x32xf32, #tpu.memory_space<vmem>>, vector<2x32xf32>,
    %c14 = arith.constant 14 : index
    %c0_55 = arith.constant 0 : index
    %148 = vector.load %arg11[%c14, %c0_55] : memref<16x128xf32, #tpu.memory_space<vmem>>, vector<2x128xf32>
    %cst_56 = arith.constant dense<0.000000e+00> : vector<2x128xf32>
    %149 = tpu.matmul %146, %10, %cst_56 {dimension_numbers = #tpu.dot_dimension_numbers<[1], [0], [0], [1], [0, 0, 1, 1], [], []>} : vector<2x32xf32>, vector<32x128xf32>, vector<2x128xf32> -> vector<2x128xf32>
    %150 = arith.addf %148, %149 : vector<2x128xf32>
    %151 = arith.negf %150 : vector<2x128xf32>
    %152 = math.exp %151 : vector<2x128xf32>
    %cst_57 = arith.constant 1.000000e+00 : f32
    %153 = vector.broadcast %cst_57 : f32 to vector<2x128xf32>
    %154 = arith.addf %153, %152 : vector<2x128xf32>
    %155 = arith.divf %153, %154 : vector<2x128xf32>
    %156 = vector.extract_strided_slice %155 {offsets = [0, 0], sizes = [2, 32], strides = [1, 1]} : vector<2x128xf32> to vector<2x32xf32>
    %157 = vector.extract_strided_slice %155 {offsets = [0, 32], sizes = [2, 32], strides = [1, 1]} : vector<2x128xf32> to vector<2x32xf32>
    %158 = vector.extract_strided_slice %155 {offsets = [0, 96], sizes = [2, 32], strides = [1, 1]} : vector<2x128xf32> to vector<2x32xf32>
    %159 = vector.extract_strided_slice %150 {offsets = [0, 64], sizes = [2, 32], strides = [1, 1]} : vector<2x128xf32> to vector<2x32xf32>
    %160 = math.tanh %159 : vector<2x32xf32>
    %161 = arith.mulf %157, %144 : vector<2x32xf32>
    %162 = arith.mulf %156, %160 : vector<2x32xf32>
    %163 = arith.addf %161, %162 : vector<2x32xf32>
    %164 = math.tanh %163 : vector<2x32xf32>
    %165 = arith.mulf %158, %164 : vector<2x32xf32>
    %c14_58 = arith.constant 14 : index
    %c0_59 = arith.constant 0 : index
    %166 = vector.load %arg12[%c14_58, %c0_59] : memref<16x32xf32, #tpu.memory_space<vmem>>, vector<2x32xf32>
    tpu.vector_store %arg12[%c14_58, %c0_59], %165 {strides = array<i32>} : memref<16x32xf32, #tpu.memory_space<vmem>>, vector<2x32xf32>,
    %c0_60 = arith.constant 0 : index
    %c0_61 = arith.constant 0 : index
    %c0_62 = arith.constant 0 : index
    %167 = vector.load %arg9[%c0_60, %c0_61, %c0_62] : memref<2x2x32xf32, #tpu.memory_space<vmem>>, vector<1x2x32xf32>
    %168 = vector.shape_cast %167 : vector<1x2x32xf32> to vector<2x32xf32>
    %169 = vector.shape_cast %165 : vector<2x32xf32> to vector<1x2x32xf32>
    tpu.vector_store %arg9[%c0_60, %c0_61, %c0_62], %169 {strides = array<i32>} : memref<2x2x32xf32, #tpu.memory_space<vmem>>, vector<1x2x32xf32>,
    %c0_63 = arith.constant 0 : index
    %c0_64 = arith.constant 0 : index
    %c0_65 = arith.constant 0 : index
    %170 = vector.load %arg10[%c0_63, %c0_64, %c0_65] : memref<2x2x32xf32, #tpu.memory_space<vmem>>, vector<1x2x32xf32>
    %171 = vector.shape_cast %170 : vector<1x2x32xf32> to vector<2x32xf32>
    %172 = vector.shape_cast %163 : vector<2x32xf32> to vector<1x2x32xf32>
    tpu.vector_store %arg10[%c0_63, %c0_64, %c0_65], %172 {strides = array<i32>} : memref<2x2x32xf32, #tpu.memory_space<vmem>>, vector<1x2x32xf32>,
    %c0_66 = arith.constant 0 : index
    %c0_67 = arith.constant 0 : index
    %173 = vector.load %arg12[%c0_66, %c0_67] : memref<16x32xf32, #tpu.memory_space<vmem>>, vector<16x32xf32>
    %c1_68 = arith.constant 1 : index
    %c0_69 = arith.constant 0 : index
    %c0_70 = arith.constant 0 : index
    %c0_71 = arith.constant 0 : index
    %174 = vector.load %arg2[%c1_68, %c0_69, %c0_70, %c0_71] : memref<2x2x32x128xf32, #tpu.memory_space<vmem>>, vector<1x1x32x128xf32>
    %175 = vector.shape_cast %174 : vector<1x1x32x128xf32> to vector<32x128xf32>
    %cst_72 = arith.constant dense<0.000000e+00> : vector<16x128xf32>
    %176 = tpu.matmul %173, %175, %cst_72 {dimension_numbers = #tpu.dot_dimension_numbers<[1], [0], [0], [1], [0, 0, 1, 1], [], []>} : vector<16x32xf32>, vector<32x128xf32>, vector<16x128xf32> -> vector<16x128xf32>
    %c1_73 = arith.constant 1 : index
    %c0_74 = arith.constant 0 : index
    %c0_75 = arith.constant 0 : index
    %177 = vector.load %arg3[%c1_73, %c0_74, %c0_75] : memref<2x1x128xf32, #tpu.memory_space<vmem>>, vector<1x1x128xf32>
    %178 = vector.shape_cast %177 : vector<1x1x128xf32> to vector<1x128xf32>
    %179 = vector.broadcast %178 : vector<1x128xf32> to vector<16x128xf32>
    %180 = arith.addf %176, %179 : vector<16x128xf32>
    %c0_76 = arith.constant 0 : index
    %c0_77 = arith.constant 0 : index
    %181 = vector.load %arg11[%c0_76, %c0_77] : memref<16x128xf32, #tpu.memory_space<vmem>>, vector<16x128xf32>
    tpu.vector_store %arg11[%c0_76, %c0_77], %180 {strides = array<i32>} : memref<16x128xf32, #tpu.memory_space<vmem>>, vector<16x128xf32>,
    %c1_78 = arith.constant 1 : index
    %c1_79 = arith.constant 1 : index
    %c0_80 = arith.constant 0 : index
    %c0_81 = arith.constant 0 : index
    %182 = vector.load %arg2[%c1_78, %c1_79, %c0_80, %c0_81] : memref<2x2x32x128xf32, #tpu.memory_space<vmem>>, vector<1x1x32x128xf32>
    %183 = vector.shape_cast %182 : vector<1x1x32x128xf32> to vector<32x128xf32>
    %c1_82 = arith.constant 1 : index
    %c0_83 = arith.constant 0 : index
    %c0_84 = arith.constant 0 : index
    %184 = vector.load %arg6[%c1_82, %c0_83, %c0_84] : memref<2x2x32xf32, #tpu.memory_space<vmem>>, vector<1x2x32xf32>
    %185 = vector.shape_cast %184 : vector<1x2x32xf32> to vector<2x32xf32>
    %c1_85 = arith.constant 1 : index
    %c0_86 = arith.constant 0 : index
    %c0_87 = arith.constant 0 : index
    %186 = vector.load %arg7[%c1_85, %c0_86, %c0_87] : memref<2x2x32xf32, #tpu.memory_space<vmem>>, vector<1x2x32xf32>
    %187 = vector.shape_cast %186 : vector<1x2x32xf32> to vector<2x32xf32>
    %c0_88 = arith.constant 0 : index
    %c0_89 = arith.constant 0 : index
    %188 = vector.load %arg11[%c0_88, %c0_89] : memref<16x128xf32, #tpu.memory_space<vmem>>, vector<2x128xf32>
    %cst_90 = arith.constant dense<0.000000e+00> : vector<2x128xf32>
    %189 = tpu.matmul %185, %183, %cst_90 {dimension_numbers = #tpu.dot_dimension_numbers<[1], [0], [0], [1], [0, 0, 1, 1], [], []>} : vector<2x32xf32>, vector<32x128xf32>, vector<2x128xf32> -> vector<2x128xf32>
    %190 = arith.addf %188, %189 : vector<2x128xf32>
    %191 = arith.negf %190 : vector<2x128xf32>
    %192 = math.exp %191 : vector<2x128xf32>
    %cst_91 = arith.constant 1.000000e+00 : f32
    %193 = vector.broadcast %cst_91 : f32 to vector<2x128xf32>
    %194 = arith.addf %193, %192 : vector<2x128xf32>
    %195 = arith.divf %193, %194 : vector<2x128xf32>
    %196 = vector.extract_strided_slice %195 {offsets = [0, 0], sizes = [2, 32], strides = [1, 1]} : vector<2x128xf32> to vector<2x32xf32>
    %197 = vector.extract_strided_slice %195 {offsets = [0, 32], sizes = [2, 32], strides = [1, 1]} : vector<2x128xf32> to vector<2x32xf32>
    %198 = vector.extract_strided_slice %195 {offsets = [0, 96], sizes = [2, 32], strides = [1, 1]} : vector<2x128xf32> to vector<2x32xf32>
    %199 = vector.extract_strided_slice %190 {offsets = [0, 64], sizes = [2, 32], strides = [1, 1]} : vector<2x128xf32> to vector<2x32xf32>
    %200 = math.tanh %199 : vector<2x32xf32>
    %201 = arith.mulf %197, %187 : vector<2x32xf32>
    %202 = arith.mulf %196, %200 : vector<2x32xf32>
    %203 = arith.addf %201, %202 : vector<2x32xf32>
    %204 = math.tanh %203 : vector<2x32xf32>
    %205 = arith.mulf %198, %204 : vector<2x32xf32>
    %c0_92 = arith.constant 0 : index
    %c0_93 = arith.constant 0 : index
    %206 = vector.load %arg12[%c0_92, %c0_93] : memref<16x32xf32, #tpu.memory_space<vmem>>, vector<2x32xf32>
    tpu.vector_store %arg12[%c0_92, %c0_93], %205 {strides = array<i32>} : memref<16x32xf32, #tpu.memory_space<vmem>>, vector<2x32xf32>,
    %c2_94 = arith.constant 2 : index
    %c0_95 = arith.constant 0 : index
    %207 = vector.load %arg11[%c2_94, %c0_95] : memref<16x128xf32, #tpu.memory_space<vmem>>, vector<2x128xf32>
    %cst_96 = arith.constant dense<0.000000e+00> : vector<2x128xf32>
    %208 = tpu.matmul %205, %183, %cst_96 {dimension_numbers = #tpu.dot_dimension_numbers<[1], [0], [0], [1], [0, 0, 1, 1], [], []>} : vector<2x32xf32>, vector<32x128xf32>, vector<2x128xf32> -> vector<2x128xf32>
    %209 = arith.addf %207, %208 : vector<2x128xf32>
    %210 = arith.negf %209 : vector<2x128xf32>
    %211 = math.exp %210 : vector<2x128xf32>
    %cst_97 = arith.constant 1.000000e+00 : f32
    %212 = vector.broadcast %cst_97 : f32 to vector<2x128xf32>
    %213 = arith.addf %212, %211 : vector<2x128xf32>
    %214 = arith.divf %212, %213 : vector<2x128xf32>
    %215 = vector.extract_strided_slice %214 {offsets = [0, 0], sizes = [2, 32], strides = [1, 1]} : vector<2x128xf32> to vector<2x32xf32>
    %216 = vector.extract_strided_slice %214 {offsets = [0, 32], sizes = [2, 32], strides = [1, 1]} : vector<2x128xf32> to vector<2x32xf32>
    %217 = vector.extract_strided_slice %214 {offsets = [0, 96], sizes = [2, 32], strides = [1, 1]} : vector<2x128xf32> to vector<2x32xf32>
    %218 = vector.extract_strided_slice %209 {offsets = [0, 64], sizes = [2, 32], strides = [1, 1]} : vector<2x128xf32> to vector<2x32xf32>
    %219 = math.tanh %218 : vector<2x32xf32>
    %220 = arith.mulf %216, %203 : vector<2x32xf32>
    %221 = arith.mulf %215, %219 : vector<2x32xf32>
    %222 = arith.addf %220, %221 : vector<2x32xf32>
    %223 = math.tanh %222 : vector<2x32xf32>
    %224 = arith.mulf %217, %223 : vector<2x32xf32>
    %c2_98 = arith.constant 2 : index
    %c0_99 = arith.constant 0 : index
    %225 = vector.load %arg12[%c2_98, %c0_99] : memref<16x32xf32, #tpu.memory_space<vmem>>, vector<2x32xf32>
    tpu.vector_store %arg12[%c2_98, %c0_99], %224 {strides = array<i32>} : memref<16x32xf32, #tpu.memory_space<vmem>>, vector<2x32xf32>,
    %c4_100 = arith.constant 4 : index
    %c0_101 = arith.constant 0 : index
    %226 = vector.load %arg11[%c4_100, %c0_101] : memref<16x128xf32, #tpu.memory_space<vmem>>, vector<2x128xf32>
    %cst_102 = arith.constant dense<0.000000e+00> : vector<2x128xf32>
    %227 = tpu.matmul %224, %183, %cst_102 {dimension_numbers = #tpu.dot_dimension_numbers<[1], [0], [0], [1], [0, 0, 1, 1], [], []>} : vector<2x32xf32>, vector<32x128xf32>, vector<2x128xf32> -> vector<2x128xf32>
    %228 = arith.addf %226, %227 : vector<2x128xf32>
    %229 = arith.negf %228 : vector<2x128xf32>
    %230 = math.exp %229 : vector<2x128xf32>
    %cst_103 = arith.constant 1.000000e+00 : f32
    %231 = vector.broadcast %cst_103 : f32 to vector<2x128xf32>
    %232 = arith.addf %231, %230 : vector<2x128xf32>
    %233 = arith.divf %231, %232 : vector<2x128xf32>
    %234 = vector.extract_strided_slice %233 {offsets = [0, 0], sizes = [2, 32], strides = [1, 1]} : vector<2x128xf32> to vector<2x32xf32>
    %235 = vector.extract_strided_slice %233 {offsets = [0, 32], sizes = [2, 32], strides = [1, 1]} : vector<2x128xf32> to vector<2x32xf32>
    %236 = vector.extract_strided_slice %233 {offsets = [0, 96], sizes = [2, 32], strides = [1, 1]} : vector<2x128xf32> to vector<2x32xf32>
    %237 = vector.extract_strided_slice %228 {offsets = [0, 64], sizes = [2, 32], strides = [1, 1]} : vector<2x128xf32> to vector<2x32xf32>
    %238 = math.tanh %237 : vector<2x32xf32>
    %239 = arith.mulf %235, %222 : vector<2x32xf32>
    %240 = arith.mulf %234, %238 : vector<2x32xf32>
    %241 = arith.addf %239, %240 : vector<2x32xf32>
    %242 = math.tanh %241 : vector<2x32xf32>
    %243 = arith.mulf %236, %242 : vector<2x32xf32>
    %c4_104 = arith.constant 4 : index
    %c0_105 = arith.constant 0 : index
    %244 = vector.load %arg12[%c4_104, %c0_105] : memref<16x32xf32, #tpu.memory_space<vmem>>, vector<2x32xf32>
    tpu.vector_store %arg12[%c4_104, %c0_105], %243 {strides = array<i32>} : memref<16x32xf32, #tpu.memory_space<vmem>>, vector<2x32xf32>,
    %c6_106 = arith.constant 6 : index
    %c0_107 = arith.constant 0 : index
    %245 = vector.load %arg11[%c6_106, %c0_107] : memref<16x128xf32, #tpu.memory_space<vmem>>, vector<2x128xf32>
    %cst_108 = arith.constant dense<0.000000e+00> : vector<2x128xf32>
    %246 = tpu.matmul %243, %183, %cst_108 {dimension_numbers = #tpu.dot_dimension_numbers<[1], [0], [0], [1], [0, 0, 1, 1], [], []>} : vector<2x32xf32>, vector<32x128xf32>, vector<2x128xf32> -> vector<2x128xf32>
    %247 = arith.addf %245, %246 : vector<2x128xf32>
    %248 = arith.negf %247 : vector<2x128xf32>
    %249 = math.exp %248 : vector<2x128xf32>
    %cst_109 = arith.constant 1.000000e+00 : f32
    %250 = vector.broadcast %cst_109 : f32 to vector<2x128xf32>
    %251 = arith.addf %250, %249 : vector<2x128xf32>
    %252 = arith.divf %250, %251 : vector<2x128xf32>
    %253 = vector.extract_strided_slice %252 {offsets = [0, 0], sizes = [2, 32], strides = [1, 1]} : vector<2x128xf32> to vector<2x32xf32>
    %254 = vector.extract_strided_slice %252 {offsets = [0, 32], sizes = [2, 32], strides = [1, 1]} : vector<2x128xf32> to vector<2x32xf32>
    %255 = vector.extract_strided_slice %252 {offsets = [0, 96], sizes = [2, 32], strides = [1, 1]} : vector<2x128xf32> to vector<2x32xf32>
    %256 = vector.extract_strided_slice %247 {offsets = [0, 64], sizes = [2, 32], strides = [1, 1]} : vector<2x128xf32> to vector<2x32xf32>
    %257 = math.tanh %256 : vector<2x32xf32>
    %258 = arith.mulf %254, %241 : vector<2x32xf32>
    %259 = arith.mulf %253, %257 : vector<2x32xf32>
    %260 = arith.addf %258, %259 : vector<2x32xf32>
    %261 = math.tanh %260 : vector<2x32xf32>
    %262 = arith.mulf %255, %261 : vector<2x32xf32>
    %c6_110 = arith.constant 6 : index
    %c0_111 = arith.constant 0 : index
    %263 = vector.load %arg12[%c6_110, %c0_111] : memref<16x32xf32, #tpu.memory_space<vmem>>, vector<2x32xf32>
    tpu.vector_store %arg12[%c6_110, %c0_111], %262 {strides = array<i32>} : memref<16x32xf32, #tpu.memory_space<vmem>>, vector<2x32xf32>,
    %c8_112 = arith.constant 8 : index
    %c0_113 = arith.constant 0 : index
    %264 = vector.load %arg11[%c8_112, %c0_113] : memref<16x128xf32, #tpu.memory_space<vmem>>, vector<2x128xf32>
    %cst_114 = arith.constant dense<0.000000e+00> : vector<2x128xf32>
    %265 = tpu.matmul %262, %183, %cst_114 {dimension_numbers = #tpu.dot_dimension_numbers<[1], [0], [0], [1], [0, 0, 1, 1], [], []>} : vector<2x32xf32>, vector<32x128xf32>, vector<2x128xf32> -> vector<2x128xf32>
    %266 = arith.addf %264, %265 : vector<2x128xf32>
    %267 = arith.negf %266 : vector<2x128xf32>
    %268 = math.exp %267 : vector<2x128xf32>
    %cst_115 = arith.constant 1.000000e+00 : f32
    %269 = vector.broadcast %cst_115 : f32 to vector<2x128xf32>
    %270 = arith.addf %269, %268 : vector<2x128xf32>
    %271 = arith.divf %269, %270 : vector<2x128xf32>
    %272 = vector.extract_strided_slice %271 {offsets = [0, 0], sizes = [2, 32], strides = [1, 1]} : vector<2x128xf32> to vector<2x32xf32>
    %273 = vector.extract_strided_slice %271 {offsets = [0, 32], sizes = [2, 32], strides = [1, 1]} : vector<2x128xf32> to vector<2x32xf32>
    %274 = vector.extract_strided_slice %271 {offsets = [0, 96], sizes = [2, 32], strides = [1, 1]} : vector<2x128xf32> to vector<2x32xf32>
    %275 = vector.extract_strided_slice %266 {offsets = [0, 64], sizes = [2, 32], strides = [1, 1]} : vector<2x128xf32> to vector<2x32xf32>
    %276 = math.tanh %275 : vector<2x32xf32>
    %277 = arith.mulf %273, %260 : vector<2x32xf32>
    %278 = arith.mulf %272, %276 : vector<2x32xf32>
    %279 = arith.addf %277, %278 : vector<2x32xf32>
    %280 = math.tanh %279 : vector<2x32xf32>
    %281 = arith.mulf %274, %280 : vector<2x32xf32>
    %c8_116 = arith.constant 8 : index
    %c0_117 = arith.constant 0 : index
    %282 = vector.load %arg12[%c8_116, %c0_117] : memref<16x32xf32, #tpu.memory_space<vmem>>, vector<2x32xf32>
    tpu.vector_store %arg12[%c8_116, %c0_117], %281 {strides = array<i32>} : memref<16x32xf32, #tpu.memory_space<vmem>>, vector<2x32xf32>,
    %c10_118 = arith.constant 10 : index
    %c0_119 = arith.constant 0 : index
    %283 = vector.load %arg11[%c10_118, %c0_119] : memref<16x128xf32, #tpu.memory_space<vmem>>, vector<2x128xf32>
    %cst_120 = arith.constant dense<0.000000e+00> : vector<2x128xf32>
    %284 = tpu.matmul %281, %183, %cst_120 {dimension_numbers = #tpu.dot_dimension_numbers<[1], [0], [0], [1], [0, 0, 1, 1], [], []>} : vector<2x32xf32>, vector<32x128xf32>, vector<2x128xf32> -> vector<2x128xf32>
    %285 = arith.addf %283, %284 : vector<2x128xf32>
    %286 = arith.negf %285 : vector<2x128xf32>
    %287 = math.exp %286 : vector<2x128xf32>
    %cst_121 = arith.constant 1.000000e+00 : f32
    %288 = vector.broadcast %cst_121 : f32 to vector<2x128xf32>
    %289 = arith.addf %288, %287 : vector<2x128xf32>
    %290 = arith.divf %288, %289 : vector<2x128xf32>
    %291 = vector.extract_strided_slice %290 {offsets = [0, 0], sizes = [2, 32], strides = [1, 1]} : vector<2x128xf32> to vector<2x32xf32>
    %292 = vector.extract_strided_slice %290 {offsets = [0, 32], sizes = [2, 32], strides = [1, 1]} : vector<2x128xf32> to vector<2x32xf32>
    %293 = vector.extract_strided_slice %290 {offsets = [0, 96], sizes = [2, 32], strides = [1, 1]} : vector<2x128xf32> to vector<2x32xf32>
    %294 = vector.extract_strided_slice %285 {offsets = [0, 64], sizes = [2, 32], strides = [1, 1]} : vector<2x128xf32> to vector<2x32xf32>
    %295 = math.tanh %294 : vector<2x32xf32>
    %296 = arith.mulf %292, %279 : vector<2x32xf32>
    %297 = arith.mulf %291, %295 : vector<2x32xf32>
    %298 = arith.addf %296, %297 : vector<2x32xf32>
    %299 = math.tanh %298 : vector<2x32xf32>
    %300 = arith.mulf %293, %299 : vector<2x32xf32>
    %c10_122 = arith.constant 10 : index
    %c0_123 = arith.constant 0 : index
    %301 = vector.load %arg12[%c10_122, %c0_123] : memref<16x32xf32, #tpu.memory_space<vmem>>, vector<2x32xf32>
    tpu.vector_store %arg12[%c10_122, %c0_123], %300 {strides = array<i32>} : memref<16x32xf32, #tpu.memory_space<vmem>>, vector<2x32xf32>,
    %c12_124 = arith.constant 12 : index
    %c0_125 = arith.constant 0 : index
    %302 = vector.load %arg11[%c12_124, %c0_125] : memref<16x128xf32, #tpu.memory_space<vmem>>, vector<2x128xf32>
    %cst_126 = arith.constant dense<0.000000e+00> : vector<2x128xf32>
    %303 = tpu.matmul %300, %183, %cst_126 {dimension_numbers = #tpu.dot_dimension_numbers<[1], [0], [0], [1], [0, 0, 1, 1], [], []>} : vector<2x32xf32>, vector<32x128xf32>, vector<2x128xf32> -> vector<2x128xf32>
    %304 = arith.addf %302, %303 : vector<2x128xf32>
    %305 = arith.negf %304 : vector<2x128xf32>
    %306 = math.exp %305 : vector<2x128xf32>
    %cst_127 = arith.constant 1.000000e+00 : f32
    %307 = vector.broadcast %cst_127 : f32 to vector<2x128xf32>
    %308 = arith.addf %307, %306 : vector<2x128xf32>
    %309 = arith.divf %307, %308 : vector<2x128xf32>
    %310 = vector.extract_strided_slice %309 {offsets = [0, 0], sizes = [2, 32], strides = [1, 1]} : vector<2x128xf32> to vector<2x32xf32>
    %311 = vector.extract_strided_slice %309 {offsets = [0, 32], sizes = [2, 32], strides = [1, 1]} : vector<2x128xf32> to vector<2x32xf32>
    %312 = vector.extract_strided_slice %309 {offsets = [0, 96], sizes = [2, 32], strides = [1, 1]} : vector<2x128xf32> to vector<2x32xf32>
    %313 = vector.extract_strided_slice %304 {offsets = [0, 64], sizes = [2, 32], strides = [1, 1]} : vector<2x128xf32> to vector<2x32xf32>
    %314 = math.tanh %313 : vector<2x32xf32>
    %315 = arith.mulf %311, %298 : vector<2x32xf32>
    %316 = arith.mulf %310, %314 : vector<2x32xf32>
    %317 = arith.addf %315, %316 : vector<2x32xf32>
    %318 = math.tanh %317 : vector<2x32xf32>
    %319 = arith.mulf %312, %318 : vector<2x32xf32>
    %c12_128 = arith.constant 12 : index
    %c0_129 = arith.constant 0 : index
    %320 = vector.load %arg12[%c12_128, %c0_129] : memref<16x32xf32, #tpu.memory_space<vmem>>, vector<2x32xf32>
    tpu.vector_store %arg12[%c12_128, %c0_129], %319 {strides = array<i32>} : memref<16x32xf32, #tpu.memory_space<vmem>>, vector<2x32xf32>,
    %c14_130 = arith.constant 14 : index
    %c0_131 = arith.constant 0 : index
    %321 = vector.load %arg11[%c14_130, %c0_131] : memref<16x128xf32, #tpu.memory_space<vmem>>, vector<2x128xf32>
    %cst_132 = arith.constant dense<0.000000e+00> : vector<2x128xf32>
    %322 = tpu.matmul %319, %183, %cst_132 {dimension_numbers = #tpu.dot_dimension_numbers<[1], [0], [0], [1], [0, 0, 1, 1], [], []>} : vector<2x32xf32>, vector<32x128xf32>, vector<2x128xf32> -> vector<2x128xf32>
    %323 = arith.addf %321, %322 : vector<2x128xf32>
    %324 = arith.negf %323 : vector<2x128xf32>
    %325 = math.exp %324 : vector<2x128xf32>
    %cst_133 = arith.constant 1.000000e+00 : f32
    %326 = vector.broadcast %cst_133 : f32 to vector<2x128xf32>
    %327 = arith.addf %326, %325 : vector<2x128xf32>
    %328 = arith.divf %326, %327 : vector<2x128xf32>
    %329 = vector.extract_strided_slice %328 {offsets = [0, 0], sizes = [2, 32], strides = [1, 1]} : vector<2x128xf32> to vector<2x32xf32>
    %330 = vector.extract_strided_slice %328 {offsets = [0, 32], sizes = [2, 32], strides = [1, 1]} : vector<2x128xf32> to vector<2x32xf32>
    %331 = vector.extract_strided_slice %328 {offsets = [0, 96], sizes = [2, 32], strides = [1, 1]} : vector<2x128xf32> to vector<2x32xf32>
    %332 = vector.extract_strided_slice %323 {offsets = [0, 64], sizes = [2, 32], strides = [1, 1]} : vector<2x128xf32> to vector<2x32xf32>
    %333 = math.tanh %332 : vector<2x32xf32>
    %334 = arith.mulf %330, %317 : vector<2x32xf32>
    %335 = arith.mulf %329, %333 : vector<2x32xf32>
    %336 = arith.addf %334, %335 : vector<2x32xf32>
    %337 = math.tanh %336 : vector<2x32xf32>
    %338 = arith.mulf %331, %337 : vector<2x32xf32>
    %c14_134 = arith.constant 14 : index
    %c0_135 = arith.constant 0 : index
    %339 = vector.load %arg12[%c14_134, %c0_135] : memref<16x32xf32, #tpu.memory_space<vmem>>, vector<2x32xf32>
    tpu.vector_store %arg12[%c14_134, %c0_135], %338 {strides = array<i32>} : memref<16x32xf32, #tpu.memory_space<vmem>>, vector<2x32xf32>,
    %c1_136 = arith.constant 1 : index
    %c0_137 = arith.constant 0 : index
    %c0_138 = arith.constant 0 : index
    %340 = vector.load %arg9[%c1_136, %c0_137, %c0_138] : memref<2x2x32xf32, #tpu.memory_space<vmem>>, vector<1x2x32xf32>
    %341 = vector.shape_cast %340 : vector<1x2x32xf32> to vector<2x32xf32>
    %342 = vector.shape_cast %338 : vector<2x32xf32> to vector<1x2x32xf32>
    tpu.vector_store %arg9[%c1_136, %c0_137, %c0_138], %342 {strides = array<i32>} : memref<2x2x32xf32, #tpu.memory_space<vmem>>, vector<1x2x32xf32>,
    %c1_139 = arith.constant 1 : index
    %c0_140 = arith.constant 0 : index
    %c0_141 = arith.constant 0 : index
    %343 = vector.load %arg10[%c1_139, %c0_140, %c0_141] : memref<2x2x32xf32, #tpu.memory_space<vmem>>, vector<1x2x32xf32>
    %344 = vector.shape_cast %343 : vector<1x2x32xf32> to vector<2x32xf32>
    %345 = vector.shape_cast %336 : vector<2x32xf32> to vector<1x2x32xf32>
    tpu.vector_store %arg10[%c1_139, %c0_140, %c0_141], %345 {strides = array<i32>} : memref<2x2x32xf32, #tpu.memory_space<vmem>>, vector<1x2x32xf32>,
    %c0_142 = arith.constant 0 : index
    %c0_143 = arith.constant 0 : index
    %346 = vector.load %arg12[%c0_142, %c0_143] : memref<16x32xf32, #tpu.memory_space<vmem>>, vector<16x32xf32>
    %c0_144 = arith.constant 0 : index
    %c0_145 = arith.constant 0 : index
    %347 = vector.load %arg4[%c0_144, %c0_145] : memref<32x128xf32, #tpu.memory_space<vmem>>, vector<32x128xf32>
    %cst_146 = arith.constant dense<0.000000e+00> : vector<16x128xf32>
    %348 = tpu.matmul %346, %347, %cst_146 {dimension_numbers = #tpu.dot_dimension_numbers<[1], [0], [0], [1], [0, 0, 1, 1], [], []>} : vector<16x32xf32>, vector<32x128xf32>, vector<16x128xf32> -> vector<16x128xf32>
    %c0_147 = arith.constant 0 : index
    %c0_148 = arith.constant 0 : index
    %349 = vector.load %arg5[%c0_147, %c0_148] : memref<1x128xf32, #tpu.memory_space<vmem>>, vector<1x128xf32>
    %350 = vector.broadcast %349 : vector<1x128xf32> to vector<16x128xf32>
    %351 = arith.addf %348, %350 : vector<16x128xf32>
    %c0_149 = arith.constant 0 : index
    %c0_150 = arith.constant 0 : index
    %352 = vector.load %arg8[%c0_149, %c0_150] : memref<16x128xf32, #tpu.memory_space<vmem>>, vector<16x128xf32>
    tpu.vector_store %arg8[%c0_149, %c0_150], %351 {strides = array<i32>} : memref<16x128xf32, #tpu.memory_space<vmem>>, vector<16x128xf32>,
    return
  }
  func.func @transform_0(%arg0: i32) -> (i32, i32) {
    %c0_i32 = arith.constant 0 : i32
    %c0_i32_0 = arith.constant 0 : i32
    %c0_i32_1 = arith.constant 0 : i32
    return %c0_i32, %c0_i32_0 : i32, i32
  }
  func.func @transform_1(%arg0: i32) -> (i32, i32, i32, i32) {
    %c0_i32 = arith.constant 0 : i32
    %c0_i32_0 = arith.constant 0 : i32
    %c0_i32_1 = arith.constant 0 : i32
    %c0_i32_2 = arith.constant 0 : i32
    %c0_i32_3 = arith.constant 0 : i32
    return %c0_i32, %c0_i32_0, %c0_i32_1, %c0_i32_2 : i32, i32, i32, i32
  }
  func.func @transform_2(%arg0: i32) -> (i32, i32, i32) {
    %c0_i32 = arith.constant 0 : i32
    %c0_i32_0 = arith.constant 0 : i32
    %c0_i32_1 = arith.constant 0 : i32
    %c0_i32_2 = arith.constant 0 : i32
    return %c0_i32, %c0_i32_0, %c0_i32_1 : i32, i32, i32
  }
  func.func @transform_3(%arg0: i32) -> (i32, i32) {
    %c0_i32 = arith.constant 0 : i32
    %c0_i32_0 = arith.constant 0 : i32
    %c0_i32_1 = arith.constant 0 : i32
    return %c0_i32, %c0_i32_0 : i32, i32
  }
  func.func @transform_4(%arg0: i32) -> (i32, i32) {
    %c0_i32 = arith.constant 0 : i32
    %c0_i32_0 = arith.constant 0 : i32
    %c0_i32_1 = arith.constant 0 : i32
    return %c0_i32, %c0_i32_0 : i32, i32
  }
  func.func @transform_5(%arg0: i32) -> (i32, i32, i32) {
    %c0_i32 = arith.constant 0 : i32
    %c0_i32_0 = arith.constant 0 : i32
    %c0_i32_1 = arith.constant 0 : i32
    %c0_i32_2 = arith.constant 0 : i32
    return %c0_i32, %c0_i32_0, %c0_i32_1 : i32, i32, i32
  }
  func.func @transform_6(%arg0: i32) -> (i32, i32, i32) {
    %c0_i32 = arith.constant 0 : i32
    %c0_i32_0 = arith.constant 0 : i32
    %c0_i32_1 = arith.constant 0 : i32
    %c0_i32_2 = arith.constant 0 : i32
    return %c0_i32, %c0_i32_0, %c0_i32_1 : i32, i32, i32
  }
  func.func @transform_7(%arg0: i32) -> (i32, i32) {
    %c0_i32 = arith.constant 0 : i32
    %c0_i32_0 = arith.constant 0 : i32
    %c0_i32_1 = arith.constant 0 : i32
    return %c0_i32, %c0_i32_0 : i32, i32
  }
  func.func @transform_8(%arg0: i32) -> (i32, i32, i32) {
    %c0_i32 = arith.constant 0 : i32
    %c0_i32_0 = arith.constant 0 : i32
    %c0_i32_1 = arith.constant 0 : i32
    %c0_i32_2 = arith.constant 0 : i32
    return %c0_i32, %c0_i32_0, %c0_i32_1 : i32, i32, i32
  }
  func.func @transform_9(%arg0: i32) -> (i32, i32, i32) {
    %c0_i32 = arith.constant 0 : i32
    %c0_i32_0 = arith.constant 0 : i32
    %c0_i32_1 = arith.constant 0 : i32
    %c0_i32_2 = arith.constant 0 : i32
    return %c0_i32, %c0_i32_0, %c0_i32_1 : i32, i32, i32
  }
}

</mosaic_0001>

<bundles_post_ra>
// kernel: tpu_custom_call.1
= control target key start
LH: loop header
LB: loop body
LE: loop exit
PB: predicated region body
PF: predicated region fallthrough
CT: control target
= control target key end

     0   :  { %15 = vsyncpa [#allocation5], 0  ;;  %s3252_s0 = inlined_call_operand.hbm [shape: f32[16,32], index: 0, kind: input, shape index: {}]   ;;  %s3253_s1 = inlined_call_operand.hbm [shape: f32[2,2,32,128], index: 1, kind: input, shape index: {}]   ;;  %s3254_s2 = inlined_call_operand.vmem [shape: f32[2,1,128], index: 2, kind: input, shape index: {}]   ;;  %s3255_s3 = inlined_call_operand.hbm [shape: f32[32,128], index: 3, kind: input, shape index: {}]   ;;  %s3256_s4 = inlined_call_operand.vmem [shape: f32[1,128], index: 4, kind: input, shape index: {}]   ;;  %s3257_s5 = inlined_call_operand.vmem [shape: f32[2,2,32], index: 5, kind: input, shape index: {}]   ;;  %s3258_s6 = inlined_call_operand.vmem [shape: f32[2,2,32], index: 6, kind: input, shape index: {}]   ;;  %s3259_s7 = inlined_call_operand.hbm [shape: f32[16,128], index: 7, kind: output, shape index: {0}]   ;;  %s3260_s8 = inlined_call_operand.hbm [shape: f32[2,2,32], index: 8, kind: output, shape index: {1}]   ;;  %s3261_s9 = inlined_call_operand.hbm [shape: f32[2,2,32], index: 9, kind: output, shape index: {2}]  }
   0x1   :  { %16 = vsyncpa [#allocation8], 0 }
   0x2   :  { %17 = vsyncpa [#allocation6], 0 }
   0x3   :  { %18 = vsyncpa [#allocation12], 0  ;;  %s2855_s30 = smov [#allocation7]   ;;  %s2856_s11 = smov [#allocation4]  }
   0x4   :  { %s36_s10 = sshll.u32 %s2855_s30, 4  ;;  %s24_s12 = sshll.u32 %s2856_s11, 4  ;;  %s37_s10 = int_to_ptr.vmem [resolvable:$true] %s36_s10  ;;  %s2920_s12 = int_to_ptr.vmem [resolvable:$true] %s24_s12 }
   0x5   :  { %s2715_s15 = scalar_lea.hbm %s3253_s1, 2048 }
   0x6   :  { %p2716_p0 = scmp.ne.s32.totalorder %s3253_s1, %s2715_s15  ;;  %p2719_p1 = scmp.lt.u32.totalorder %s2715_s15, %s3253_s1 }
   0x8   :  { %p2721_p2 = pnand %p2719_p1, %p2716_p0 }
   0xa   :  { %2724 = shalt.err (!%p2721_p2)
}
   0xb   :  { %s2725_s20 = scalar_lea.vmem %s37_s10, 2048  ;;  %p2730_p4 = scmp.lt.s32.totalorder %s37_s10, %s37_s10 }
   0xc   :  { %p2726_p3 = scmp.ne.s32.totalorder %s37_s10, %s2725_s20  ;;  %p2731_p5 = scmp.lt.s32.totalorder %s2725_s20, %s2725_s20 }
   0xe   :  { %p2732_p6 = por %p2731_p5, %p2730_p4 }
  0x10   :  { %p2733_p7 = pnand %p2732_p6, %p2726_p3 }
  0x12   :  { %2736 = shalt.err (!%p2733_p7)
}
  0x13   :  { %s2857_s21 = smov 128   ;;  %s2858_s22 = smov 8  }
  0x14   :  { %42 = dma.hbm_to_vmem [thread:$0]  %s3253_s1, 2048, %s37_s10, [#allocation8], %s2857_s21, %s2857_s21, %s2858_s22  }
  0x15   :  { %s2737_s27 = scalar_lea.hbm %s3252_s0, 256 }
  0x16   :  { %p2738_p8 = scmp.ne.s32.totalorder %s3252_s0, %s2737_s27  ;;  %p2741_p9 = scmp.lt.u32.totalorder %s2737_s27, %s3252_s0 }
  0x18   :  { %p2743_p10 = pnand %p2741_p9, %p2738_p8 }
  0x1a   :  { %2746 = shalt.err (!%p2743_p10)
}
  0x1b   :  { %s2747_s13 = scalar_lea.vmem %s2920_s12, 256  ;;  %p2752_p12 = scmp.lt.s32.totalorder %s2920_s12, %s2920_s12 }
  0x1c   :  { %p2748_p11 = scmp.ne.s32.totalorder %s2920_s12, %s2747_s13  ;;  %p2753_p13 = scmp.lt.s32.totalorder %s2747_s13, %s2747_s13 }
  0x1e   :  { %p2754_p0 = por %p2753_p13, %p2752_p12 }
  0x20   :  { %p2755_p1 = pnand %p2754_p0, %p2748_p11 }
  0x22   :  { %2758 = shalt.err (!%p2755_p1)
}
  0x23   :  { %30 = dma.hbm_to_vmem [thread:$0]  %s3252_s0, 256, %s2920_s12, [#allocation5], %s2857_s21, %s2857_s21, %s2858_s22  }
  0x24   :  { %s2859_s14 = smov [#allocation9]   ;;  %s2759_s18 = scalar_lea.hbm %s3255_s3, 512 }
  0x25   :  { %s50_s15 = sshll.u32 %s2859_s14, 4  ;;  %p2760_p2 = scmp.ne.s32.totalorder %s3255_s3, %s2759_s18  ;;  %s51_s15 = int_to_ptr.vmem [resolvable:$true] %s50_s15 }
  0x26   :  { %p2763_p3 = scmp.lt.u32.totalorder %s2759_s18, %s3255_s3 }
  0x28   :  { %p2765_p4 = pnand %p2763_p3, %p2760_p2 }
  0x2a   :  { %2768 = shalt.err (!%p2765_p4)
}
  0x2b   :  { %s2769_s25 = scalar_lea.vmem %s51_s15, 512  ;;  %p2774_p6 = scmp.lt.s32.totalorder %s51_s15, %s51_s15 }
  0x2c   :  { %p2770_p5 = scmp.ne.s32.totalorder %s51_s15, %s2769_s25  ;;  %p2775_p7 = scmp.lt.s32.totalorder %s2769_s25, %s2769_s25 }
  0x2e   :  { %p2776_p8 = por %p2775_p7, %p2774_p6 }
  0x30   :  { %p2777_p9 = pnand %p2776_p8, %p2770_p5 }
  0x32   :  { %2780 = shalt.err (!%p2777_p9)
}
  0x33   :  { %56 = dma.hbm_to_vmem [thread:$0]  %s3255_s3, 512, %s51_s15, [#allocation8], %s2857_s21, %s2857_s21, %s2858_s22  }
  0x34   :  { %2847 = dma.done.wait [#allocation5], 256  }
  0x35   :  { %2848 = vsyncadd [#allocation5], 4294967040 }
  0x36   :  { %2849 = dma.done.wait [#allocation8], 2560  }
  0x37   :  { %2850 = vsyncadd [#allocation8], 4294964736  ;;  %v2860_v0 = vmov 0.0|0.0   ;;  %vm2861_vm0 = vmmov 0   ;;  %v2862_v1 = vmov 0.0   ;;  %vm85_vm1 = vcmask 261120  }
  0x38   :  { %2460 = vmatprep.subr.bf16.mxu1 %v2860_v0  ;;  %2262 = vmatprep.mubr.msk.f32.mxu1 %vm2861_vm0, %v2862_v1  ;;  %v74_v2 = vld [vmem:[#allocation7] sm:$0xff]  ;;  %v75_v3 = vld [vmem:[#allocation7 + $0x8] sm:$0xff]  ;;  %v76_v4 = vld [vmem:[#allocation7 + $0x10] sm:$0xff]  ;;  %s2863_s29 = smov 64   ;;  %s2864_s13 = smov 32   ;;  %vm283_vm2 = vcmask 254976  }
  0x39   :  { %v2452_v5 = vpack.c.bf16 %v75_v3, %v74_v2  ;;  %v77_v6 = vld [vmem:[#allocation7 + $0x18] sm:$0xff]  ;;  %v72_v7 = vld [vmem:[#allocation4] sm:$0xff]  ;;  %v170_v9 = vld [vmem:[#allocation7 + $0x20] sm:$0xff]  ;;  %s2866_s16 = smov [#allocation11]  }
  0x3a   :  { %v2456_v8 = vpack.c.bf16 %v77_v6, %v76_v4  ;;  %2251 = vmatprep.mubr.msk.f32.mxu0 %vm85_vm1, %v72_v7  ;;  %v171_v10 = vld [vmem:[#allocation7 + $0x28] sm:$0xff]  ;;  %v172_v11 = vld [vmem:[#allocation7 + $0x30] sm:$0xff]  ;;  %v173_v13 = vld [vmem:[#allocation7 + $0x38] sm:$0xff]  ;;  %s2069_s17 = sshll.u32 %s2866_s16, 4  ;;  %s2070_s17 = int_to_ptr.vmem [resolvable:$true] %s2069_s17 }
  0x3b   :  { %2453 = vmatprep.subr.bf16.mxu0 %v2452_v5  ;;  %v2976_v12 = vpack.c.bf16 %v171_v10, %v170_v9  ;;  %v2979_v14 = vpack.c.bf16 %v173_v13, %v172_v11  ;;  %v73_v15 = vld [vmem:[#allocation4 + $0x8] sm:$0xff]  ;;  %v174_v16 = vld [vmem:[%s3257_s5] sm:$0x3]  ;;  %s2781_s18 = scalar_lea.vmem %s2070_s17, 64  ;;  %p2786_p11 = scmp.lt.s32.totalorder %s2070_s17, %s2070_s17 }
  0x3c   :  { %2455 = vmatpush3.bf16.msra.mxu0 %v2452_v5  ;;  %v2101_v17 = vld [vmem:[%s3254_s2] ss:$0 sm:$0xff]  ;;  %p2782_p10 = scmp.ne.s32.totalorder %s2070_s17, %s2781_s18  ;;  %p2787_p12 = scmp.lt.s32.totalorder %s2781_s18, %s2781_s18 }
  0x3d   :  { %2457 = vmatprep.subr.bf16.mxu0 %v2456_v8  ;;  %2462 = vmatpush3.bf16.msra.mxu1 %v2976_v12  ;;  %v175_v27 = vld [vmem:[%s3258_s6] sm:$0x3] }
  0x3e   :  { %2463 = vmatprep.subr.bf16.mxu1 %v2860_v0  ;;  %p2788_p13 = por %p2787_p12, %p2786_p11 }
  0x40   :  { %2459 = vmatpush3.bf16.msra.mxu0 %v2456_v8  ;;  %p2789_p0 = pnand %p2788_p13, %p2782_p10 }
  0x41   :  { %2465 = vmatpush3.bf16.msra.mxu1 %v2979_v14  ;;  %2466 = vmatprep.subr.bf16.mxu0 %v2860_v0 }
  0x42   :  { %2472 = vmatprep.subr.bf16.mxu1 %v2860_v0 }
  0x43   :  { %2252 = vmatmul.mubr.msk.f32.vlgmr.msra.gmra.mrb[0].mxu0 %vm85_vm1, %v73_v15 }
  0x44   :  { %2263 = vmatmul.mubr.msk.f32.vlgmr.msra.gmra.mrb[0].mxu1 %vm85_vm1, %v174_v16  ;;  %2468 = vmatpush3.bf16.msra.mxu0 %v2976_v12 }
  0x45   :  { %2469 = vmatprep.subr.bf16.mxu0 %v2860_v0  ;;  %2273 = vmatprep.mubr.msk.f32.mxu0 %vm2861_vm0, %v2862_v1 }
  0x46   :  { %2474 = vmatpush3.bf16.msra.mxu1 %v2976_v12  ;;  %2284 = vmatprep.mubr.msk.f32.mxu1 %vm2861_vm0, %v2862_v1 }
  0x47   :  { %2475 = vmatprep.subr.bf16.mxu1 %v2860_v0 }
  0x48   :  { %2471 = vmatpush3.bf16.msra.mxu0 %v2979_v14 }
  0x49   :  { %2478 = vmatprep.subr.bf16.mxu0 %v2860_v0 }
  0x4a   :  { %2477 = vmatpush3.bf16.msra.mxu1 %v2979_v14 }
  0x4b   :  { %2484 = vmatprep.subr.bf16.mxu1 %v2860_v0 }
 0x116   :  { %v2253_v18 = vpop.f32.mrb[0].mxu0 }
 0x117   :  { %v164_v19 = vadd.f32 %v2253_v18, %v2101_v17  ;;  %v158_v20 = vpop.f32.mrb[1].mxu0  ;;  %v246_v21 = vpop.f32.mrb[0].mxu1 }
 0x118   :  { %v159_v22 = vadd.f32 %v2101_v17, %v158_v20  ;;  %v2264_v23 = vpop.f32.mrb[1].mxu1 }
 0x119   :  { %168 = vst [vmem:[#allocation2 + $0x8] sm:$0xff] %v164_v19 }
 0x11a   :  { %167 = vst [vmem:[#allocation2] sm:$0xff] %v159_v22 }
 0x121   :  { %v176_v24 = vld [vmem:[#allocation2] sm:$0x3]  ;;  %v285_v42 = vld [vmem:[#allocation2 + $0x2] sm:$0x3]  ;;  %v388_v60 = vld [vmem:[#allocation2 + $0x4] sm:$0x3] }
 0x122   :  { %v250_v25 = vadd.f32 %v246_v21, %v176_v24  ;;  %v491_v18 = vld [vmem:[#allocation2 + $0x6] sm:$0x3] }
 0x124   :  { %2587 = vtanh.f32 %v250_v25  ;;  %v2105_v28 = vmul.f32 -1.442695, %v250_v25 }
 0x126   :  { %2589 = vpow2.f32 %v2105_v28 }
 0x12e   :  { %v2588_v26 = vpop.eup %2587 }
 0x12f   :  { %264 = vrot.lane.b32.xlu0 %v2588_v26, %s2863_s29 }
 0x130   :  { %v2590_v29 = vpop.eup %2589 }
 0x131   :  { %v254_v30 = vadd.f32 1.0, %v2590_v29 }
 0x133   :  { %259 = vrot.lane.b32.xlu0 %v175_v27, %s2864_s13  ;;  %2591 = vrcp.f32 %v254_v30 }
 0x13d   :  { %v2592_v31 = vpop.eup %2591 }
 0x1a1   :  { %v265_v32 = vpop.permute.xlu0 %264 }
 0x1a2   :  { %v267_v33 = vmul.f32 %v2592_v31, %v265_v32 }
 0x1a4   :  { %269 = vrot.lane.b32.xlu1 %v267_v33, %s2864_s13 }
 0x1a5   :  { %v260_v34 = vpop.permute.xlu0 %259 }
 0x1a6   :  { %v262_v35 = vmul.f32 %v2592_v31, %v260_v34 }
 0x216   :  { %v270_v36 = vpop.permute.xlu1 %269 }
 0x217   :  { %v272_v37 = vadd.f32 %v270_v36, %v262_v35  ;;  %v594_v36 = vld [vmem:[#allocation2 + $0x8] sm:$0x3] }
 0x219   :  { %2593 = vtanh.f32 %v272_v37 }
 0x223   :  { %v2594_v38 = vpop.eup %2593 }
 0x224   :  { %275 = vrot.lane.b32.xlu1 %v2594_v38, %s2863_s29 }
 0x296   :  { %v276_v39 = vpop.permute.xlu1 %275 }
 0x297   :  { %v278_v40 = vmul.f32 %v2592_v31, %v276_v39 }
 0x299   :  { %280 = vrot.lane.b32.xlu0 %v278_v40, %s2864_s13 }
 0x30b   :  { %v281_v41 = vpop.permute.xlu0 %280 }
 0x30c   :  { %284 = vst.msk [vmem:[#allocation3] sm:$0x3] %vm283_vm2, %v281_v41  ;;  %2274 = vmatmul.mubr.msk.f32.vlgmr.msra.gmra.mrb[2].mxu0 %vm85_vm1, %v281_v41 }
 0x30d   :  { %2480 = vmatpush3.bf16.msra.mxu0 %v2976_v12  ;;  %2295 = vmatprep.mubr.msk.f32.mxu0 %vm2861_vm0, %v2862_v1 }
 0x30e   :  { %2481 = vmatprep.subr.bf16.mxu0 %v2860_v0 }
 0x311   :  { %2483 = vmatpush3.bf16.msra.mxu0 %v2979_v14 }
 0x312   :  { %2490 = vmatprep.subr.bf16.mxu0 %v2860_v0 }
 0x3df   :  { %v354_v43 = vpop.f32.mrb[2].mxu0 }
 0x3e0   :  { %v358_v44 = vadd.f32 %v354_v43, %v285_v42  ;;  %v2275_v45 = vpop.f32.mrb[3].mxu0 }
 0x3e2   :  { %2595 = vtanh.f32 %v358_v44  ;;  %v2107_v47 = vmul.f32 -1.442695, %v358_v44 }
 0x3e4   :  { %2597 = vpow2.f32 %v2107_v47 }
 0x3ec   :  { %v2596_v46 = vpop.eup %2595 }
 0x3ed   :  { %368 = vrot.lane.b32.xlu1 %v2596_v46, %s2863_s29 }
 0x3ee   :  { %v2598_v48 = vpop.eup %2597 }
 0x3ef   :  { %v362_v49 = vadd.f32 1.0, %v2598_v48 }
 0x3f1   :  { %2599 = vrcp.f32 %v362_v49 }
 0x3fb   :  { %v2600_v50 = vpop.eup %2599 }
 0x3fc   :  { %v366_v53 = vmul.f32 %v2600_v50, %v272_v37 }
 0x45f   :  { %v369_v51 = vpop.permute.xlu1 %368 }
 0x460   :  { %v371_v52 = vmul.f32 %v2600_v50, %v369_v51 }
 0x462   :  { %373 = vrot.lane.b32.xlu0 %v371_v52, %s2864_s13 }
 0x4d4   :  { %v374_v54 = vpop.permute.xlu0 %373 }
 0x4d5   :  { %v376_v55 = vadd.f32 %v374_v54, %v366_v53  ;;  %v697_v54 = vld [vmem:[#allocation2 + $0xa] sm:$0x3] }
 0x4d7   :  { %2601 = vtanh.f32 %v376_v55 }
 0x4e1   :  { %v2602_v56 = vpop.eup %2601 }
 0x4e2   :  { %379 = vrot.lane.b32.xlu1 %v2602_v56, %s2863_s29 }
 0x554   :  { %v380_v57 = vpop.permute.xlu1 %379 }
 0x555   :  { %v382_v58 = vmul.f32 %v2600_v50, %v380_v57 }
 0x557   :  { %384 = vrot.lane.b32.xlu0 %v382_v58, %s2864_s13 }
 0x5c9   :  { %v385_v59 = vpop.permute.xlu0 %384 }
 0x5ca   :  { %387 = vst.msk [vmem:[#allocation3 + $0x2] sm:$0x3] %vm283_vm2, %v385_v59  ;;  %2285 = vmatmul.mubr.msk.f32.vlgmr.msra.gmra.mrb[2].mxu1 %vm85_vm1, %v385_v59 }
 0x5cb   :  { %2486 = vmatpush3.bf16.msra.mxu1 %v2976_v12  ;;  %2306 = vmatprep.mubr.msk.f32.mxu1 %vm2861_vm0, %v2862_v1 }
 0x5cc   :  { %2487 = vmatprep.subr.bf16.mxu1 %v2860_v0 }
 0x5cf   :  { %2489 = vmatpush3.bf16.msra.mxu1 %v2979_v14 }
 0x5d0   :  { %2496 = vmatprep.subr.bf16.mxu1 %v2860_v0 }
 0x69d   :  { %v457_v61 = vpop.f32.mrb[2].mxu1 }
 0x69e   :  { %v461_v62 = vadd.f32 %v457_v61, %v388_v60  ;;  %v2286_v63 = vpop.f32.mrb[3].mxu1 }
 0x6a0   :  { %2603 = vtanh.f32 %v461_v62  ;;  %v2109_v3 = vmul.f32 -1.442695, %v461_v62 }
 0x6a2   :  { %2605 = vpow2.f32 %v2109_v3 }
 0x6aa   :  { %v2604_v2 = vpop.eup %2603 }
 0x6ab   :  { %471 = vrot.lane.b32.xlu1 %v2604_v2, %s2863_s29 }
 0x6ac   :  { %v2606_v4 = vpop.eup %2605 }
 0x6ad   :  { %v465_v5 = vadd.f32 1.0, %v2606_v4 }
 0x6af   :  { %2607 = vrcp.f32 %v465_v5 }
 0x6b9   :  { %v2608_v6 = vpop.eup %2607 }
 0x6ba   :  { %v469_v9 = vmul.f32 %v2608_v6, %v376_v55 }
 0x71d   :  { %v472_v7 = vpop.permute.xlu1 %471 }
 0x71e   :  { %v474_v8 = vmul.f32 %v2608_v6, %v472_v7 }
 0x720   :  { %476 = vrot.lane.b32.xlu0 %v474_v8, %s2864_s13 }
 0x792   :  { %v477_v10 = vpop.permute.xlu0 %476 }
 0x793   :  { %v479_v11 = vadd.f32 %v477_v10, %v469_v9  ;;  %v800_v9 = vld [vmem:[#allocation2 + $0xc] sm:$0x3] }
 0x795   :  { %2609 = vtanh.f32 %v479_v11 }
 0x79f   :  { %v2610_v13 = vpop.eup %2609 }
 0x7a0   :  { %482 = vrot.lane.b32.xlu1 %v2610_v13, %s2863_s29 }
 0x812   :  { %v483_v15 = vpop.permute.xlu1 %482 }
 0x813   :  { %v485_v16 = vmul.f32 %v2608_v6, %v483_v15 }
 0x815   :  { %487 = vrot.lane.b32.xlu0 %v485_v16, %s2864_s13 }
 0x887   :  { %v488_v17 = vpop.permute.xlu0 %487 }
 0x888   :  { %490 = vst.msk [vmem:[#allocation3 + $0x4] sm:$0x3] %vm283_vm2, %v488_v17  ;;  %2296 = vmatmul.mubr.msk.f32.vlgmr.msra.gmra.mrb[4].mxu0 %vm85_vm1, %v488_v17 }
 0x889   :  { %2492 = vmatpush3.bf16.msra.mxu0 %v2976_v12  ;;  %2317 = vmatprep.mubr.msk.f32.mxu0 %vm2861_vm0, %v2862_v1 }
 0x88a   :  { %2493 = vmatprep.subr.bf16.mxu0 %v2860_v0 }
 0x88d   :  { %2495 = vmatpush3.bf16.msra.mxu0 %v2979_v14 }
 0x88e   :  { %2502 = vmatprep.subr.bf16.mxu0 %v2860_v0 }
 0x95b   :  { %v560_v19 = vpop.f32.mrb[4].mxu0 }
 0x95c   :  { %v564_v20 = vadd.f32 %v560_v19, %v491_v18  ;;  %v2297_v21 = vpop.f32.mrb[5].mxu0 }
 0x95e   :  { %2611 = vtanh.f32 %v564_v20  ;;  %v2111_v23 = vmul.f32 -1.442695, %v564_v20 }
 0x960   :  { %2613 = vpow2.f32 %v2111_v23 }
 0x968   :  { %v2612_v22 = vpop.eup %2611 }
 0x969   :  { %574 = vrot.lane.b32.xlu1 %v2612_v22, %s2863_s29 }
 0x96a   :  { %v2614_v24 = vpop.eup %2613 }
 0x96b   :  { %v568_v25 = vadd.f32 1.0, %v2614_v24 }
 0x96d   :  { %2615 = vrcp.f32 %v568_v25 }
 0x977   :  { %v2616_v26 = vpop.eup %2615 }
 0x978   :  { %v572_v29 = vmul.f32 %v2616_v26, %v479_v11 }
 0x9db   :  { %v575_v27 = vpop.permute.xlu1 %574 }
 0x9dc   :  { %v577_v28 = vmul.f32 %v2616_v26, %v575_v27 }
 0x9de   :  { %579 = vrot.lane.b32.xlu0 %v577_v28, %s2864_s13 }
 0xa50   :  { %v580_v30 = vpop.permute.xlu0 %579 }
 0xa51   :  { %v582_v31 = vadd.f32 %v580_v30, %v572_v29  ;;  %v903_v29 = vld [vmem:[#allocation2 + $0xe] sm:$0x3] }
 0xa53   :  { %2617 = vtanh.f32 %v582_v31 }
 0xa5d   :  { %v2618_v32 = vpop.eup %2617 }
 0xa5e   :  { %585 = vrot.lane.b32.xlu1 %v2618_v32, %s2863_s29 }
 0xad0   :  { %v586_v33 = vpop.permute.xlu1 %585 }
 0xad1   :  { %v588_v34 = vmul.f32 %v2616_v26, %v586_v33 }
 0xad3   :  { %590 = vrot.lane.b32.xlu0 %v588_v34, %s2864_s13 }
 0xb45   :  { %v591_v35 = vpop.permute.xlu0 %590 }
 0xb46   :  { %593 = vst.msk [vmem:[#allocation3 + $0x6] sm:$0x3] %vm283_vm2, %v591_v35  ;;  %2307 = vmatmul.mubr.msk.f32.vlgmr.msra.gmra.mrb[4].mxu1 %vm85_vm1, %v591_v35 }
 0xb47   :  { %2498 = vmatpush3.bf16.msra.mxu1 %v2976_v12  ;;  %2328 = vmatprep.mubr.msk.f32.mxu1 %vm2861_vm0, %v2862_v1 }
 0xb48   :  { %2499 = vmatprep.subr.bf16.mxu1 %v2860_v0 }
 0xb4b   :  { %2501 = vmatpush3.bf16.msra.mxu1 %v2979_v14 }
 0xb4d   :  { %v1012_v8 = vld [vmem:[#allocation3] sm:$0xff] }
 0xc19   :  { %v663_v37 = vpop.f32.mrb[4].mxu1 }
 0xc1a   :  { %v667_v38 = vadd.f32 %v663_v37, %v594_v36  ;;  %v2308_v39 = vpop.f32.mrb[5].mxu1 }
 0xc1c   :  { %2619 = vtanh.f32 %v667_v38  ;;  %v2113_v41 = vmul.f32 -1.442695, %v667_v38 }
 0xc1e   :  { %2621 = vpow2.f32 %v2113_v41 }
 0xc26   :  { %v2620_v40 = vpop.eup %2619 }
 0xc27   :  { %677 = vrot.lane.b32.xlu1 %v2620_v40, %s2863_s29 }
 0xc28   :  { %v2622_v42 = vpop.eup %2621 }
 0xc29   :  { %v671_v43 = vadd.f32 1.0, %v2622_v42 }
 0xc2b   :  { %2623 = vrcp.f32 %v671_v43 }
 0xc35   :  { %v2624_v44 = vpop.eup %2623 }
 0xc36   :  { %v675_v47 = vmul.f32 %v2624_v44, %v582_v31 }
 0xc99   :  { %v678_v45 = vpop.permute.xlu1 %677 }
 0xc9a   :  { %v680_v46 = vmul.f32 %v2624_v44, %v678_v45  ;;  %v1016_v45 = vld [vmem:[#allocation7 + $0x48] sm:$0xff] }
 0xc9c   :  { %682 = vrot.lane.b32.xlu0 %v680_v46, %s2864_s13 }
 0xd0e   :  { %v683_v48 = vpop.permute.xlu0 %682 }
 0xd0f   :  { %v685_v49 = vadd.f32 %v683_v48, %v675_v47  ;;  %v1017_v47 = vld [vmem:[#allocation7 + $0x50] sm:$0xff]  ;;  %v1018_v48 = vld [vmem:[#allocation7 + $0x58] sm:$0xff] }
 0xd11   :  { %2625 = vtanh.f32 %v685_v49 }
 0xd1b   :  { %v2626_v50 = vpop.eup %2625 }
 0xd1c   :  { %688 = vrot.lane.b32.xlu1 %v2626_v50, %s2863_s29  ;;  %v1111_v50 = vld [vmem:[#allocation7 + $0x60] sm:$0xff] }
 0xd8e   :  { %v689_v51 = vpop.permute.xlu1 %688 }
 0xd8f   :  { %v691_v52 = vmul.f32 %v2624_v44, %v689_v51  ;;  %v1015_v44 = vld [vmem:[#allocation7 + $0x40] sm:$0xff]  ;;  %v1112_v51 = vld [vmem:[#allocation7 + $0x68] sm:$0xff] }
 0xd90   :  { %v2508_v46 = vpack.c.bf16 %v1016_v45, %v1015_v44 }
 0xd91   :  { %693 = vrot.lane.b32.xlu0 %v691_v52, %s2864_s13  ;;  %v1113_v52 = vld [vmem:[#allocation7 + $0x70] sm:$0xff] }
 0xd92   :  { %2509 = vmatprep.subr.bf16.mxu1 %v2508_v46 }
 0xe03   :  { %v694_v53 = vpop.permute.xlu0 %693 }
 0xe04   :  { %696 = vst.msk [vmem:[#allocation3 + $0x8] sm:$0x3] %vm283_vm2, %v694_v53  ;;  %2318 = vmatmul.mubr.msk.f32.vlgmr.msra.gmra.mrb[6].mxu0 %vm85_vm1, %v694_v53  ;;  %v3090_v53 = vpack.c.bf16 %v1112_v51, %v1111_v50 }
 0xe05   :  { %2504 = vmatpush3.bf16.msra.mxu0 %v2976_v12  ;;  %2339 = vmatprep.mubr.msk.f32.mxu0 %vm2861_vm0, %v2862_v1 }
 0xe06   :  { %2505 = vmatprep.subr.bf16.mxu0 %v2860_v0 }
 0xe09   :  { %2507 = vmatpush3.bf16.msra.mxu0 %v2979_v14 }
 0xe0a   :  { %2516 = vmatprep.subr.bf16.mxu0 %v2860_v0 }
 0xed7   :  { %v766_v55 = vpop.f32.mrb[6].mxu0 }
 0xed8   :  { %v770_v56 = vadd.f32 %v766_v55, %v697_v54  ;;  %v2319_v57 = vpop.f32.mrb[7].mxu0  ;;  %v1114_v54 = vld [vmem:[#allocation7 + $0x78] sm:$0xff] }
 0xed9   :  { %v3093_v57 = vpack.c.bf16 %v1114_v54, %v1113_v52 }
 0xeda   :  { %2627 = vtanh.f32 %v770_v56  ;;  %v2115_v59 = vmul.f32 -1.442695, %v770_v56 }
 0xedc   :  { %2629 = vpow2.f32 %v2115_v59  ;;  %v2124_v59 = vld [vmem:[%s3257_s5 + $0x2] sm:$0x3] }
 0xee4   :  { %v2628_v58 = vpop.eup %2627 }
 0xee5   :  { %780 = vrot.lane.b32.xlu1 %v2628_v58, %s2863_s29  ;;  %v2125_v58 = vld [vmem:[%s3258_s6 + $0x2] sm:$0x3] }
 0xee6   :  { %v2630_v12 = vpop.eup %2629 }
 0xee7   :  { %v774_v60 = vadd.f32 1.0, %v2630_v12 }
 0xee9   :  { %2631 = vrcp.f32 %v774_v60 }
 0xef3   :  { %v2632_v61 = vpop.eup %2631 }
 0xef4   :  { %v778_v14 = vmul.f32 %v2632_v61, %v685_v49  ;;  %v2512_v49 = vpack.c.bf16 %v1018_v48, %v1017_v47 }
 0xf57   :  { %v781_v62 = vpop.permute.xlu1 %780 }
 0xf58   :  { %v783_v63 = vmul.f32 %v2632_v61, %v781_v62 }
 0xf5a   :  { %785 = vrot.lane.b32.xlu0 %v783_v63, %s2864_s13  ;;  %v2121_v63 = vld [vmem:[%s3254_s2 + $0x1] ss:$0 sm:$0xff]  ;;  %s2865_s2 = smov 96  }
 0xfcc   :  { %v786_v2 = vpop.permute.xlu0 %785 }
 0xfcd   :  { %v788_v3 = vadd.f32 %v786_v2, %v778_v14 }
 0xfcf   :  { %2633 = vtanh.f32 %v788_v3 }
 0xfd9   :  { %v2634_v4 = vpop.eup %2633 }
 0xfda   :  { %791 = vrot.lane.b32.xlu1 %v2634_v4, %s2863_s29 }
0x104c   :  { %v792_v5 = vpop.permute.xlu1 %791 }
0x104d   :  { %v794_v6 = vmul.f32 %v2632_v61, %v792_v5 }
0x104f   :  { %796 = vrot.lane.b32.xlu0 %v794_v6, %s2864_s13 }
0x10c1   :  { %v797_v7 = vpop.permute.xlu0 %796 }
0x10c2   :  { %799 = vst.msk [vmem:[#allocation3 + $0xa] sm:$0x3] %vm283_vm2, %v797_v7  ;;  %2329 = vmatmul.mubr.msk.f32.vlgmr.msra.gmra.mrb[6].mxu1 %vm85_vm1, %v797_v7 }
0x10c3   :  { %2350 = vmatprep.mubr.msk.f32.mxu1 %vm85_vm1, %v1012_v8  ;;  %2511 = vmatpush3.bf16.msra.mxu1 %v2508_v46 }
0x10c4   :  { %2513 = vmatprep.subr.bf16.mxu1 %v2512_v49 }
0x10c7   :  { %2515 = vmatpush3.bf16.msra.mxu1 %v2512_v49 }
0x10c8   :  { %2522 = vmatprep.subr.bf16.mxu1 %v2860_v0 }
0x1195   :  { %v869_v10 = vpop.f32.mrb[6].mxu1 }
0x1196   :  { %v873_v11 = vadd.f32 %v869_v10, %v800_v9  ;;  %v2330_v13 = vpop.f32.mrb[7].mxu1 }
0x1198   :  { %2635 = vtanh.f32 %v873_v11  ;;  %v2117_v16 = vmul.f32 -1.442695, %v873_v11 }
0x119a   :  { %2637 = vpow2.f32 %v2117_v16 }
0x11a2   :  { %v2636_v15 = vpop.eup %2635 }
0x11a3   :  { %883 = vrot.lane.b32.xlu1 %v2636_v15, %s2863_s29 }
0x11a4   :  { %v2638_v17 = vpop.eup %2637 }
0x11a5   :  { %v877_v18 = vadd.f32 1.0, %v2638_v17 }
0x11a7   :  { %2639 = vrcp.f32 %v877_v18 }
0x11b1   :  { %v2640_v19 = vpop.eup %2639 }
0x11b2   :  { %v881_v22 = vmul.f32 %v2640_v19, %v788_v3 }
0x1215   :  { %v884_v20 = vpop.permute.xlu1 %883 }
0x1216   :  { %v886_v21 = vmul.f32 %v2640_v19, %v884_v20 }
0x1218   :  { %888 = vrot.lane.b32.xlu0 %v886_v21, %s2864_s13 }
0x128a   :  { %v889_v23 = vpop.permute.xlu0 %888 }
0x128b   :  { %v891_v24 = vadd.f32 %v889_v23, %v881_v22 }
0x128d   :  { %2641 = vtanh.f32 %v891_v24 }
0x1297   :  { %v2642_v25 = vpop.eup %2641 }
0x1298   :  { %894 = vrot.lane.b32.xlu1 %v2642_v25, %s2863_s29 }
0x130a   :  { %v895_v26 = vpop.permute.xlu1 %894 }
0x130b   :  { %v897_v27 = vmul.f32 %v2640_v19, %v895_v26 }
0x130d   :  { %899 = vrot.lane.b32.xlu0 %v897_v27, %s2864_s13 }
0x137f   :  { %v900_v28 = vpop.permute.xlu0 %899 }
0x1380   :  { %902 = vst.msk [vmem:[#allocation3 + $0xc] sm:$0x3] %vm283_vm2, %v900_v28  ;;  %2340 = vmatmul.mubr.msk.f32.vlgmr.msra.gmra.mrb[8].mxu0 %vm85_vm1, %v900_v28 }
0x1381   :  { %2361 = vmatprep.mubr.msk.f32.mxu0 %vm2861_vm0, %v2862_v1  ;;  %2518 = vmatpush3.bf16.msra.mxu0 %v3090_v53 }
0x1382   :  { %2519 = vmatprep.subr.bf16.mxu0 %v2860_v0 }
0x1385   :  { %2521 = vmatpush3.bf16.msra.mxu0 %v3093_v57 }
0x1386   :  { %2528 = vmatprep.subr.bf16.mxu0 %v2860_v0 }
0x1388   :  { %2362 = vmatmul.mubr.msk.f32.vlgmr.msra.gmra.mrb[10].mxu0 %vm85_vm1, %v2124_v59 }
0x1389   :  { %2530 = vmatpush3.bf16.msra.mxu0 %v3090_v53  ;;  %2383 = vmatprep.mubr.msk.f32.mxu0 %vm2861_vm0, %v2862_v1 }
0x138a   :  { %2531 = vmatprep.subr.bf16.mxu0 %v2860_v0 }
0x138d   :  { %2533 = vmatpush3.bf16.msra.mxu0 %v3093_v57 }
0x138e   :  { %2540 = vmatprep.subr.bf16.mxu0 %v2860_v0 }
0x1453   :  { %v972_v30 = vpop.f32.mrb[8].mxu0 }
0x1454   :  { %v976_v31 = vadd.f32 %v972_v30, %v903_v29  ;;  %v2341_v32 = vpop.f32.mrb[9].mxu0 }
0x1456   :  { %2643 = vtanh.f32 %v976_v31  ;;  %v2119_v34 = vmul.f32 -1.442695, %v976_v31 }
0x1458   :  { %2645 = vpow2.f32 %v2119_v34 }
0x145b   :  { %v1189_v61 = vpop.f32.mrb[10].mxu0 }
0x145c   :  { %v2363_v62 = vpop.f32.mrb[11].mxu0 }
0x1460   :  { %v2644_v33 = vpop.eup %2643 }
0x1461   :  { %986 = vrot.lane.b32.xlu1 %v2644_v33, %s2863_s29 }
0x1462   :  { %v2646_v35 = vpop.eup %2645 }
0x1463   :  { %v980_v36 = vadd.f32 1.0, %v2646_v35 }
0x1465   :  { %2647 = vrcp.f32 %v980_v36 }
0x146f   :  { %v2648_v37 = vpop.eup %2647 }
0x1470   :  { %v984_v40 = vmul.f32 %v2648_v37, %v891_v24 }
0x14d3   :  { %v987_v38 = vpop.permute.xlu1 %986 }
0x14d4   :  { %v989_v39 = vmul.f32 %v2648_v37, %v987_v38 }
0x14d6   :  { %991 = vrot.lane.b32.xlu0 %v989_v39, %s2864_s13 }
0x1548   :  { %v992_v41 = vpop.permute.xlu0 %991 }
0x1549   :  { %v3085_v42 = vadd.f32 %v992_v41, %v984_v40 }
0x154b   :  { %2649 = vtanh.f32 %v3085_v42 }
0x1555   :  { %v2650_v43 = vpop.eup %2649 }
0x1556   :  { %997 = vrot.lane.b32.xlu1 %v2650_v43, %s2863_s29 }
0x15c8   :  { %v998_v55 = vpop.permute.xlu1 %997 }
0x15c9   :  { %v1000_v56 = vmul.f32 %v2648_v37, %v998_v55 }
0x15cb   :  { %1002 = vrot.lane.b32.xlu0 %v1000_v56, %s2864_s13 }
0x15cf   :  { %1202 = vrot.lane.b32.xlu0 %v2125_v58, %s2864_s13 }
0x163d   :  { %v1003_v12 = vpop.permute.xlu0 %1002 }
0x163e   :  { %1005 = vst.msk [vmem:[#allocation3 + $0xe] sm:$0x3] %vm283_vm2, %v1003_v12  ;;  %1006 = vst.msk [vmem:[#allocation11] sm:$0x3] %vm283_vm2, %v1003_v12 }
0x1641   :  { %v1203_v16 = vpop.permute.xlu0 %1202 }
0x1645   :  { %v1013_v60 = vld [vmem:[#allocation3 + $0x8] sm:$0xff] }
0x1646   :  { %2351 = vmatmul.mubr.msk.f32.vlgmr.msra.gmra.mrb[8].mxu1 %vm85_vm1, %v1013_v60 }
0x1647   :  { %2524 = vmatpush3.bf16.msra.mxu1 %v3090_v53  ;;  %2372 = vmatprep.mubr.msk.f32.mxu1 %vm2861_vm0, %v2862_v1 }
0x1648   :  { %2525 = vmatprep.subr.bf16.mxu1 %v2860_v0 }
0x164b   :  { %2527 = vmatpush3.bf16.msra.mxu1 %v3093_v57 }
0x164c   :  { %2534 = vmatprep.subr.bf16.mxu1 %v2860_v0 }
0x1719   :  { %v2352_v14 = vpop.f32.mrb[8].mxu1 }
0x171a   :  { %v1105_v2 = vadd.f32 %v2352_v14, %v2121_v63  ;;  %v1099_v3 = vpop.f32.mrb[9].mxu1 }
0x171b   :  { %v1100_v4 = vadd.f32 %v2121_v63, %v1099_v3 }
0x171c   :  { %1109 = vst [vmem:[#allocation2 + $0x8] sm:$0xff] %v1105_v2 }
0x171d   :  { %1108 = vst [vmem:[#allocation2] sm:$0xff] %v1100_v4 }
0x1724   :  { %v1119_v5 = vld [vmem:[#allocation2] sm:$0x3]  ;;  %v1227_v24 = vld [vmem:[#allocation2 + $0x2] sm:$0x3]  ;;  %v1330_v43 = vld [vmem:[#allocation2 + $0x4] sm:$0x3] }
0x1725   :  { %v1193_v6 = vadd.f32 %v1189_v61, %v1119_v5  ;;  %v1433_v62 = vld [vmem:[#allocation2 + $0x6] sm:$0x3] }
0x1727   :  { %2651 = vtanh.f32 %v1193_v6  ;;  %v2127_v8 = vmul.f32 -1.442695, %v1193_v6 }
0x1729   :  { %2653 = vpow2.f32 %v2127_v8 }
0x1731   :  { %v2652_v7 = vpop.eup %2651 }
0x1732   :  { %1207 = vrot.lane.b32.xlu1 %v2652_v7, %s2863_s29 }
0x1733   :  { %v2654_v9 = vpop.eup %2653 }
0x1734   :  { %v1197_v10 = vadd.f32 1.0, %v2654_v9 }
0x1736   :  { %2655 = vrcp.f32 %v1197_v10 }
0x1740   :  { %v2656_v11 = vpop.eup %2655 }
0x1741   :  { %v1205_v17 = vmul.f32 %v2656_v11, %v1203_v16 }
0x17a4   :  { %v1208_v13 = vpop.permute.xlu1 %1207 }
0x17a5   :  { %v1210_v15 = vmul.f32 %v2656_v11, %v1208_v13 }
0x17a7   :  { %1212 = vrot.lane.b32.xlu1 %v1210_v15, %s2864_s13 }
0x1819   :  { %v1213_v18 = vpop.permute.xlu1 %1212 }
0x181a   :  { %v1215_v19 = vadd.f32 %v1213_v18, %v1205_v17 }
0x181c   :  { %2657 = vtanh.f32 %v1215_v19 }
0x1826   :  { %v2658_v20 = vpop.eup %2657 }
0x1827   :  { %1218 = vrot.lane.b32.xlu0 %v2658_v20, %s2863_s29 }
0x1899   :  { %v1219_v21 = vpop.permute.xlu0 %1218 }
0x189a   :  { %v1221_v22 = vmul.f32 %v2656_v11, %v1219_v21 }
0x189c   :  { %1223 = vrot.lane.b32.xlu1 %v1221_v22, %s2864_s13 }
0x190e   :  { %v1224_v23 = vpop.permute.xlu1 %1223 }
0x190f   :  { %1226 = vst.msk [vmem:[#allocation3] sm:$0x3] %vm283_vm2, %v1224_v23  ;;  %2373 = vmatmul.mubr.msk.f32.vlgmr.msra.gmra.mrb[10].mxu1 %vm85_vm1, %v1224_v23 }
0x1910   :  { %2536 = vmatpush3.bf16.msra.mxu1 %v3090_v53  ;;  %2394 = vmatprep.mubr.msk.f32.mxu1 %vm2861_vm0, %v2862_v1 }
0x1911   :  { %2537 = vmatprep.subr.bf16.mxu1 %v2860_v0 }
0x1914   :  { %2539 = vmatpush3.bf16.msra.mxu1 %v3093_v57 }
0x1915   :  { %2546 = vmatprep.subr.bf16.mxu1 %v2860_v0 }
0x19e2   :  { %v1296_v25 = vpop.f32.mrb[10].mxu1 }
0x19e3   :  { %v1300_v26 = vadd.f32 %v1296_v25, %v1227_v24  ;;  %v2374_v27 = vpop.f32.mrb[11].mxu1 }
0x19e5   :  { %2659 = vtanh.f32 %v1300_v26  ;;  %v2129_v29 = vmul.f32 -1.442695, %v1300_v26 }
0x19e7   :  { %2661 = vpow2.f32 %v2129_v29 }
0x19ef   :  { %v2660_v28 = vpop.eup %2659 }
0x19f0   :  { %1310 = vrot.lane.b32.xlu0 %v2660_v28, %s2863_s29 }
0x19f1   :  { %v2662_v30 = vpop.eup %2661 }
0x19f2   :  { %v1304_v31 = vadd.f32 1.0, %v2662_v30 }
0x19f4   :  { %2663 = vrcp.f32 %v1304_v31 }
0x19fe   :  { %v2664_v32 = vpop.eup %2663 }
0x19ff   :  { %v1308_v35 = vmul.f32 %v2664_v32, %v1215_v19  ;;  %v1536_v19 = vld [vmem:[#allocation2 + $0x8] sm:$0x3] }
0x1a62   :  { %v1311_v33 = vpop.permute.xlu0 %1310 }
0x1a63   :  { %v1313_v34 = vmul.f32 %v2664_v32, %v1311_v33 }
0x1a65   :  { %1315 = vrot.lane.b32.xlu1 %v1313_v34, %s2864_s13 }
0x1ad7   :  { %v1316_v36 = vpop.permute.xlu1 %1315 }
0x1ad8   :  { %v1318_v37 = vadd.f32 %v1316_v36, %v1308_v35 }
0x1ada   :  { %2665 = vtanh.f32 %v1318_v37 }
0x1ae4   :  { %v2666_v38 = vpop.eup %2665 }
0x1ae5   :  { %1321 = vrot.lane.b32.xlu0 %v2666_v38, %s2863_s29 }
0x1b57   :  { %v1322_v39 = vpop.permute.xlu0 %1321 }
0x1b58   :  { %v1324_v40 = vmul.f32 %v2664_v32, %v1322_v39 }
0x1b5a   :  { %1326 = vrot.lane.b32.xlu1 %v1324_v40, %s2864_s13 }
0x1bcc   :  { %v1327_v41 = vpop.permute.xlu1 %1326 }
0x1bcd   :  { %1329 = vst.msk [vmem:[#allocation3 + $0x2] sm:$0x3] %vm283_vm2, %v1327_v41  ;;  %2384 = vmatmul.mubr.msk.f32.vlgmr.msra.gmra.mrb[12].mxu0 %vm85_vm1, %v1327_v41 }
0x1bce   :  { %2542 = vmatpush3.bf16.msra.mxu0 %v3090_v53  ;;  %2405 = vmatprep.mubr.msk.f32.mxu0 %vm2861_vm0, %v2862_v1 }
0x1bcf   :  { %2543 = vmatprep.subr.bf16.mxu0 %v2860_v0 }
0x1bd2   :  { %2545 = vmatpush3.bf16.msra.mxu0 %v3093_v57 }
0x1bd3   :  { %2552 = vmatprep.subr.bf16.mxu0 %v2860_v0 }
0x1ca0   :  { %v1399_v44 = vpop.f32.mrb[12].mxu0 }
0x1ca1   :  { %v1403_v45 = vadd.f32 %v1399_v44, %v1330_v43  ;;  %v2385_v46 = vpop.f32.mrb[13].mxu0 }
0x1ca3   :  { %2667 = vtanh.f32 %v1403_v45  ;;  %v2131_v48 = vmul.f32 -1.442695, %v1403_v45 }
0x1ca5   :  { %2669 = vpow2.f32 %v2131_v48 }
0x1cad   :  { %v2668_v47 = vpop.eup %2667 }
0x1cae   :  { %1413 = vrot.lane.b32.xlu0 %v2668_v47, %s2863_s29 }
0x1caf   :  { %v2670_v49 = vpop.eup %2669 }
0x1cb0   :  { %v1407_v50 = vadd.f32 1.0, %v2670_v49 }
0x1cb2   :  { %2671 = vrcp.f32 %v1407_v50 }
0x1cbc   :  { %v2672_v51 = vpop.eup %2671 }
0x1cbd   :  { %v1411_v55 = vmul.f32 %v2672_v51, %v1318_v37  ;;  %v1639_v37 = vld [vmem:[#allocation2 + $0xa] sm:$0x3] }
0x1d20   :  { %v1414_v52 = vpop.permute.xlu0 %1413 }
0x1d21   :  { %v1416_v54 = vmul.f32 %v2672_v51, %v1414_v52 }
0x1d23   :  { %1418 = vrot.lane.b32.xlu1 %v1416_v54, %s2864_s13  ;;  %v1742_v54 = vld [vmem:[#allocation2 + $0xc] sm:$0x3] }
0x1d95   :  { %v1419_v56 = vpop.permute.xlu1 %1418 }
0x1d96   :  { %v1421_v58 = vadd.f32 %v1419_v56, %v1411_v55 }
0x1d98   :  { %2673 = vtanh.f32 %v1421_v58 }
0x1da2   :  { %v2674_v59 = vpop.eup %2673 }
0x1da3   :  { %1424 = vrot.lane.b32.xlu0 %v2674_v59, %s2863_s29 }
0x1e15   :  { %v1425_v12 = vpop.permute.xlu0 %1424 }
0x1e16   :  { %v1427_v60 = vmul.f32 %v2672_v51, %v1425_v12 }
0x1e18   :  { %1429 = vrot.lane.b32.xlu1 %v1427_v60, %s2864_s13 }
0x1e8a   :  { %v1430_v61 = vpop.permute.xlu1 %1429 }
0x1e8b   :  { %1432 = vst.msk [vmem:[#allocation3 + $0x4] sm:$0x3] %vm283_vm2, %v1430_v61  ;;  %2395 = vmatmul.mubr.msk.f32.vlgmr.msra.gmra.mrb[12].mxu1 %vm85_vm1, %v1430_v61 }
0x1e8c   :  { %2548 = vmatpush3.bf16.msra.mxu1 %v3090_v53  ;;  %2416 = vmatprep.mubr.msk.f32.mxu1 %vm2861_vm0, %v2862_v1 }
0x1e8d   :  { %2549 = vmatprep.subr.bf16.mxu1 %v2860_v0 }
0x1e90   :  { %2551 = vmatpush3.bf16.msra.mxu1 %v3093_v57 }
0x1e91   :  { %2558 = vmatprep.subr.bf16.mxu1 %v2860_v0 }
0x1f5e   :  { %v1502_v63 = vpop.f32.mrb[12].mxu1 }
0x1f5f   :  { %v1506_v14 = vadd.f32 %v1502_v63, %v1433_v62  ;;  %v2396_v2 = vpop.f32.mrb[13].mxu1 }
0x1f61   :  { %2675 = vtanh.f32 %v1506_v14  ;;  %v2133_v4 = vmul.f32 -1.442695, %v1506_v14 }
0x1f63   :  { %2677 = vpow2.f32 %v2133_v4 }
0x1f6b   :  { %v2676_v3 = vpop.eup %2675 }
0x1f6c   :  { %1516 = vrot.lane.b32.xlu0 %v2676_v3, %s2863_s29 }
0x1f6d   :  { %v2678_v5 = vpop.eup %2677 }
0x1f6e   :  { %v1510_v6 = vadd.f32 1.0, %v2678_v5 }
0x1f70   :  { %2679 = vrcp.f32 %v1510_v6 }
0x1f7a   :  { %v2680_v7 = vpop.eup %2679 }
0x1f7b   :  { %v1514_v10 = vmul.f32 %v2680_v7, %v1421_v58 }
0x1fde   :  { %v1517_v8 = vpop.permute.xlu0 %1516 }
0x1fdf   :  { %v1519_v9 = vmul.f32 %v2680_v7, %v1517_v8 }
0x1fe1   :  { %1521 = vrot.lane.b32.xlu1 %v1519_v9, %s2864_s13  ;;  %v1845_v9 = vld [vmem:[#allocation2 + $0xe] sm:$0x3] }
0x2053   :  { %v1522_v11 = vpop.permute.xlu1 %1521 }
0x2054   :  { %v1524_v13 = vadd.f32 %v1522_v11, %v1514_v10 }
0x2056   :  { %2681 = vtanh.f32 %v1524_v13 }
0x2060   :  { %v2682_v15 = vpop.eup %2681 }
0x2061   :  { %1527 = vrot.lane.b32.xlu0 %v2682_v15, %s2863_s29 }
0x20d3   :  { %v1528_v16 = vpop.permute.xlu0 %1527 }
0x20d4   :  { %v1530_v17 = vmul.f32 %v2680_v7, %v1528_v16 }
0x20d6   :  { %1532 = vrot.lane.b32.xlu1 %v1530_v17, %s2864_s13 }
0x2148   :  { %v1533_v18 = vpop.permute.xlu1 %1532 }
0x2149   :  { %1535 = vst.msk [vmem:[#allocation3 + $0x6] sm:$0x3] %vm283_vm2, %v1533_v18  ;;  %2406 = vmatmul.mubr.msk.f32.vlgmr.msra.gmra.mrb[14].mxu0 %vm85_vm1, %v1533_v18 }
0x214a   :  { %2554 = vmatpush3.bf16.msra.mxu0 %v3090_v53  ;;  %2427 = vmatprep.mubr.msk.f32.mxu0 %vm2861_vm0, %v2862_v1 }
0x214b   :  { %2555 = vmatprep.subr.bf16.mxu0 %v2860_v0 }
0x214e   :  { %2557 = vmatpush3.bf16.msra.mxu0 %v3093_v57 }
0x2150   :  { %v1956_v52 = vld [vmem:[#allocation3] sm:$0xff] }
0x221c   :  { %v1605_v20 = vpop.f32.mrb[14].mxu0 }
0x221d   :  { %v1609_v21 = vadd.f32 %v1605_v20, %v1536_v19  ;;  %v2407_v22 = vpop.f32.mrb[15].mxu0 }
0x221f   :  { %2683 = vtanh.f32 %v1609_v21  ;;  %v2135_v24 = vmul.f32 -1.442695, %v1609_v21 }
0x2221   :  { %2685 = vpow2.f32 %v2135_v24 }
0x2229   :  { %v2684_v23 = vpop.eup %2683 }
0x222a   :  { %1619 = vrot.lane.b32.xlu0 %v2684_v23, %s2863_s29 }
0x222b   :  { %v2686_v25 = vpop.eup %2685 }
0x222c   :  { %v1613_v26 = vadd.f32 1.0, %v2686_v25 }
0x222e   :  { %2687 = vrcp.f32 %v1613_v26  ;;  %v1958_v26 = vld [vmem:[#allocation9] sm:$0xff] }
0x2238   :  { %v2688_v27 = vpop.eup %2687 }
0x2239   :  { %v1617_v30 = vmul.f32 %v2688_v27, %v1524_v13 }
0x229c   :  { %v1620_v28 = vpop.permute.xlu0 %1619 }
0x229d   :  { %v1622_v29 = vmul.f32 %v2688_v27, %v1620_v28 }
0x229f   :  { %1624 = vrot.lane.b32.xlu1 %v1622_v29, %s2864_s13  ;;  %v1960_v29 = vld [vmem:[#allocation9 + $0x10] sm:$0xff] }
0x2311   :  { %v1625_v31 = vpop.permute.xlu1 %1624 }
0x2312   :  { %v1627_v32 = vadd.f32 %v1625_v31, %v1617_v30  ;;  %v1961_v30 = vld [vmem:[#allocation9 + $0x18] sm:$0xff] }
0x2313   :  { %v2568_v31 = vpack.c.bf16 %v1961_v30, %v1960_v29 }
0x2314   :  { %2689 = vtanh.f32 %v1627_v32 }
0x231e   :  { %v2690_v33 = vpop.eup %2689 }
0x231f   :  { %1630 = vrot.lane.b32.xlu0 %v2690_v33, %s2863_s29 }
0x2391   :  { %v1631_v34 = vpop.permute.xlu0 %1630 }
0x2392   :  { %v1633_v35 = vmul.f32 %v2688_v27, %v1631_v34  ;;  %v1959_v27 = vld [vmem:[#allocation9 + $0x8] sm:$0xff] }
0x2393   :  { %v2564_v28 = vpack.c.bf16 %v1959_v27, %v1958_v26 }
0x2394   :  { %1635 = vrot.lane.b32.xlu1 %v1633_v35, %s2864_s13 }
0x2395   :  { %2565 = vmatprep.subr.bf16.mxu0 %v2564_v28 }
0x2406   :  { %v1636_v36 = vpop.permute.xlu1 %1635 }
0x2407   :  { %1638 = vst.msk [vmem:[#allocation3 + $0x8] sm:$0x3] %vm283_vm2, %v1636_v36  ;;  %2417 = vmatmul.mubr.msk.f32.vlgmr.msra.gmra.mrb[14].mxu1 %vm85_vm1, %v1636_v36 }
0x2408   :  { %2560 = vmatpush3.bf16.msra.mxu1 %v3090_v53  ;;  %2438 = vmatprep.mubr.msk.f32.mxu1 %vm2861_vm0, %v2862_v1 }
0x2409   :  { %2561 = vmatprep.subr.bf16.mxu1 %v2860_v0 }
0x240c   :  { %2563 = vmatpush3.bf16.msra.mxu1 %v3093_v57 }
0x24da   :  { %v1708_v38 = vpop.f32.mrb[14].mxu1 }
0x24db   :  { %v1712_v39 = vadd.f32 %v1708_v38, %v1639_v37  ;;  %v2418_v40 = vpop.f32.mrb[15].mxu1 }
0x24dd   :  { %2691 = vtanh.f32 %v1712_v39  ;;  %v2137_v43 = vmul.f32 -1.442695, %v1712_v39 }
0x24df   :  { %2693 = vpow2.f32 %v2137_v43 }
0x24e7   :  { %v2692_v41 = vpop.eup %2691 }
0x24e8   :  { %1722 = vrot.lane.b32.xlu0 %v2692_v41, %s2863_s29 }
0x24e9   :  { %v2694_v44 = vpop.eup %2693 }
0x24ea   :  { %v1716_v45 = vadd.f32 1.0, %v2694_v44 }
0x24ec   :  { %2695 = vrcp.f32 %v1716_v45 }
0x24f6   :  { %v2696_v53 = vpop.eup %2695 }
0x24f7   :  { %v1720_v0 = vmul.f32 %v2696_v53, %v1627_v32 }
0x255a   :  { %v1723_v46 = vpop.permute.xlu0 %1722 }
0x255b   :  { %v1725_v1 = vmul.f32 %v2696_v53, %v1723_v46 }
0x255d   :  { %1727 = vrot.lane.b32.xlu1 %v1725_v1, %s2864_s13 }
0x25cf   :  { %v1728_v57 = vpop.permute.xlu1 %1727 }
0x25d0   :  { %v1730_v47 = vadd.f32 %v1728_v57, %v1720_v0 }
0x25d2   :  { %2697 = vtanh.f32 %v1730_v47 }
0x25dc   :  { %v2698_v48 = vpop.eup %2697 }
0x25dd   :  { %1733 = vrot.lane.b32.xlu0 %v2698_v48, %s2863_s29 }
0x264f   :  { %v1734_v49 = vpop.permute.xlu0 %1733 }
0x2650   :  { %v1736_v50 = vmul.f32 %v2696_v53, %v1734_v49 }
0x2652   :  { %1738 = vrot.lane.b32.xlu1 %v1736_v50, %s2864_s13 }
0x26c4   :  { %v1739_v51 = vpop.permute.xlu1 %1738 }
0x26c5   :  { %1741 = vst.msk [vmem:[#allocation3 + $0xa] sm:$0x3] %vm283_vm2, %v1739_v51  ;;  %2428 = vmatmul.mubr.msk.f32.vlgmr.msra.gmra.mrb[16].mxu0 %vm85_vm1, %v1739_v51 }
0x26c6   :  { %2449 = vmatprep.mubr.msk.f32.mxu0 %vm85_vm1, %v1956_v52  ;;  %2567 = vmatpush3.bf16.msra.mxu0 %v2564_v28 }
0x26c7   :  { %2569 = vmatprep.subr.bf16.mxu0 %v2568_v31 }
0x26ca   :  { %2571 = vmatpush3.bf16.msra.mxu0 %v2568_v31 }
0x2798   :  { %v1811_v55 = vpop.f32.mrb[16].mxu0 }
0x2799   :  { %v1815_v56 = vadd.f32 %v1811_v55, %v1742_v54  ;;  %v2429_v58 = vpop.f32.mrb[17].mxu0 }
0x279b   :  { %2699 = vtanh.f32 %v1815_v56  ;;  %v2139_v12 = vmul.f32 -1.442695, %v1815_v56 }
0x279d   :  { %2701 = vpow2.f32 %v2139_v12 }
0x27a5   :  { %v2700_v59 = vpop.eup %2699 }
0x27a6   :  { %1825 = vrot.lane.b32.xlu0 %v2700_v59, %s2863_s29 }
0x27a7   :  { %v2702_v60 = vpop.eup %2701 }
0x27a8   :  { %v1819_v61 = vadd.f32 1.0, %v2702_v60 }
0x27aa   :  { %2703 = vrcp.f32 %v1819_v61 }
0x27b4   :  { %v2704_v62 = vpop.eup %2703 }
0x27b5   :  { %v1823_v2 = vmul.f32 %v2704_v62, %v1730_v47 }
0x2818   :  { %v1826_v63 = vpop.permute.xlu0 %1825 }
0x2819   :  { %v1828_v14 = vmul.f32 %v2704_v62, %v1826_v63 }
0x281b   :  { %1830 = vrot.lane.b32.xlu1 %v1828_v14, %s2864_s13 }
0x288d   :  { %v1831_v3 = vpop.permute.xlu1 %1830 }
0x288e   :  { %v1833_v4 = vadd.f32 %v1831_v3, %v1823_v2 }
0x2890   :  { %2705 = vtanh.f32 %v1833_v4 }
0x289a   :  { %v2706_v5 = vpop.eup %2705 }
0x289b   :  { %1836 = vrot.lane.b32.xlu0 %v2706_v5, %s2863_s29 }
0x290d   :  { %v1837_v6 = vpop.permute.xlu0 %1836 }
0x290e   :  { %v1839_v7 = vmul.f32 %v2704_v62, %v1837_v6 }
0x2910   :  { %1841 = vrot.lane.b32.xlu1 %v1839_v7, %s2864_s13 }
0x2982   :  { %v1842_v8 = vpop.permute.xlu1 %1841 }
0x2983   :  { %1844 = vst.msk [vmem:[#allocation3 + $0xc] sm:$0x3] %vm283_vm2, %v1842_v8  ;;  %2439 = vmatmul.mubr.msk.f32.vlgmr.msra.gmra.mrb[16].mxu1 %vm85_vm1, %v1842_v8 }
0x2a56   :  { %v1914_v10 = vpop.f32.mrb[16].mxu1 }
0x2a57   :  { %v1918_v11 = vadd.f32 %v1914_v10, %v1845_v9  ;;  %v2440_v13 = vpop.f32.mrb[17].mxu1 }
0x2a59   :  { %2707 = vtanh.f32 %v1918_v11  ;;  %v2141_v16 = vmul.f32 -1.442695, %v1918_v11 }
0x2a5b   :  { %2709 = vpow2.f32 %v2141_v16 }
0x2a63   :  { %v2708_v15 = vpop.eup %2707 }
0x2a64   :  { %1928 = vrot.lane.b32.xlu0 %v2708_v15, %s2863_s29 }
0x2a65   :  { %v2710_v17 = vpop.eup %2709 }
0x2a66   :  { %v1922_v18 = vadd.f32 1.0, %v2710_v17 }
0x2a68   :  { %2711 = vrcp.f32 %v1922_v18 }
0x2a72   :  { %v2712_v19 = vpop.eup %2711 }
0x2a73   :  { %v1926_v22 = vmul.f32 %v2712_v19, %v1833_v4 }
0x2ad6   :  { %v1929_v20 = vpop.permute.xlu0 %1928 }
0x2ad7   :  { %v1931_v21 = vmul.f32 %v2712_v19, %v1929_v20 }
0x2ad9   :  { %1933 = vrot.lane.b32.xlu1 %v1931_v21, %s2864_s13 }
0x2b4b   :  { %v1934_v23 = vpop.permute.xlu1 %1933 }
0x2b4c   :  { %v1936_v24 = vadd.f32 %v1934_v23, %v1926_v22 }
0x2b4e   :  { %2713 = vtanh.f32 %v1936_v24 }
0x2b58   :  { %v2714_v25 = vpop.eup %2713 }
0x2b59   :  { %1939 = vrot.lane.b32.xlu0 %v2714_v25, %s2863_s29 }
0x2b5d   :  { %1008 = vrot.lane.b32.xlu0 %v3085_v42, %s2865_s2 }
0x2bcb   :  { %v1940_v32 = vpop.permute.xlu0 %1939 }
0x2bcc   :  { %v1942_v33 = vmul.f32 %v2712_v19, %v1940_v32 }
0x2bce   :  { %1944 = vrot.lane.b32.xlu1 %v1942_v33, %s2864_s13 }
0x2bcf   :  { %v1009_v34 = vpop.permute.xlu0 %1008 }
0x2bd0   :  { %1011 = vst.msk [vmem:[#allocation13] sm:$0x3] %vm283_vm2, %v1009_v34 }
0x2bd2   :  { %1951 = vrot.lane.b32.xlu1 %v1936_v24, %s2865_s2 }
0x2c40   :  { %v1945_v35 = vpop.permute.xlu1 %1944 }
0x2c41   :  { %1947 = vst.msk [vmem:[#allocation3 + $0xe] sm:$0x3] %vm283_vm2, %v1945_v35  ;;  %1949 = vst.msk [vmem:[#allocation11 + $0x2] sm:$0x3] %vm283_vm2, %v1945_v35 }
0x2c44   :  { %v1952_v42 = vpop.permute.xlu1 %1951 }
0x2c45   :  { %1955 = vst.msk [vmem:[#allocation13 + $0x2] sm:$0x3] %vm283_vm2, %v1952_v42 }
0x2c48   :  { %v1957_v36 = vld [vmem:[#allocation3 + $0x8] sm:$0xff] }
0x2c49   :  { %2450 = vmatmul.mubr.msk.f32.vlgmr.msra.gmra.mrb[18].mxu0 %vm85_vm1, %v1957_v36 }
0x2c4a   :  { %2792 = shalt.err (!%p2789_p0)
}
0x2c4b   :  { %s2793_s23 = scalar_lea.hbm %s3260_s8, 64 }
0x2c4c   :  { %p2794_p1 = scmp.ne.s32.totalorder %s3260_s8, %s2793_s23  ;;  %p2797_p2 = scmp.lt.u32.totalorder %s2793_s23, %s3260_s8 }
0x2c4e   :  { %p2799_p3 = pnand %p2797_p2, %p2794_p1 }
0x2c50   :  { %2802 = shalt.err (!%p2799_p3)
}
0x2c51   :  { %s2867_s3 = smov 2   ;;  %s2868_s28 = smov [#allocation13]  }
0x2c52   :  { %2075 = dma.vmem_to_hbm [thread:$0]  %s2070_s17, 64, %s3260_s8, [#allocation12], %s2864_s13, %s2864_s13, %s2867_s3  }
0x2c53   :  { %s2081_s29 = sshll.u32 %s2868_s28, 4  ;;  %s2082_s29 = int_to_ptr.vmem [resolvable:$true] %s2081_s29 }
0x2c54   :  { %s2803_s30 = scalar_lea.vmem %s2082_s29, 64  ;;  %p2808_p5 = scmp.lt.s32.totalorder %s2082_s29, %s2082_s29 }
0x2c55   :  { %p2804_p4 = scmp.ne.s32.totalorder %s2082_s29, %s2803_s30  ;;  %p2809_p6 = scmp.lt.s32.totalorder %s2803_s30, %s2803_s30 }
0x2c57   :  { %p2810_p7 = por %p2809_p6, %p2808_p5 }
0x2c59   :  { %p2811_p8 = pnand %p2810_p7, %p2804_p4 }
0x2c5b   :  { %2814 = shalt.err (!%p2811_p8)
}
0x2c5c   :  { %s2815_s10 = scalar_lea.hbm %s3261_s9, 64 }
0x2c5d   :  { %p2816_p9 = scmp.ne.s32.totalorder %s3261_s9, %s2815_s10  ;;  %p2819_p10 = scmp.lt.u32.totalorder %s2815_s10, %s3261_s9 }
0x2c5f   :  { %p2821_p11 = pnand %p2819_p10, %p2816_p9 }
0x2c61   :  { %2824 = shalt.err (!%p2821_p11)
}
0x2c62   :  { %2087 = dma.vmem_to_hbm [thread:$0]  %s2082_s29, 64, %s3261_s9, [#allocation12], %s2864_s13, %s2864_s13, %s2867_s3  }
0x2c63   :  { %v2142_v37 = vld [vmem:[%s3256_s4] ss:$0 sm:$0xff]  ;;  %s2869_s18 = smov [#allocation10]  }
0x2c64   :  { %s2057_s19 = sshll.u32 %s2869_s18, 4  ;;  %s2058_s19 = int_to_ptr.vmem [resolvable:$true] %s2057_s19 }
0x2c65   :  { %s2825_s20 = scalar_lea.vmem %s2058_s19, 256  ;;  %p2830_p13 = scmp.lt.s32.totalorder %s2058_s19, %s2058_s19 }
0x2c66   :  { %p2826_p12 = scmp.ne.s32.totalorder %s2058_s19, %s2825_s20  ;;  %p2831_p0 = scmp.lt.s32.totalorder %s2825_s20, %s2825_s20 }
0x2c68   :  { %p2832_p1 = por %p2831_p0, %p2830_p13 }
0x2c6a   :  { %p2833_p2 = pnand %p2832_p1, %p2826_p12 }
0x2d1c   :  { %v2451_v38 = vpop.f32.mrb[18].mxu0 }
0x2d1d   :  { %v2047_v39 = vadd.f32 %v2451_v38, %v2142_v37  ;;  %v2041_v40 = vpop.f32.mrb[19].mxu0 }
0x2d1e   :  { %v2042_v41 = vadd.f32 %v2142_v37, %v2041_v40 }
0x2d1f   :  { %2051 = vst [vmem:[#allocation10 + $0x8] sm:$0xff] %v2047_v39 }
0x2d20   :  { %2050 = vst [vmem:[#allocation10] sm:$0xff] %v2042_v41 }
0x2d21   :  { %2836 = shalt.err (!%p2833_p2)
}
0x2d22   :  { %s2837_s4 = scalar_lea.hbm %s3259_s7, 256 }
0x2d23   :  { %p2838_p3 = scmp.ne.s32.totalorder %s3259_s7, %s2837_s4  ;;  %p2841_p4 = scmp.lt.u32.totalorder %s2837_s4, %s3259_s7 }
0x2d25   :  { %p2843_p5 = pnand %p2841_p4, %p2838_p3 }
0x2d27   :  { %2846 = shalt.err (!%p2843_p5)
}
0x2d28   :  { %2063 = dma.vmem_to_hbm [thread:$0]  %s2058_s19, 256, %s3259_s7, [#allocation6], %s2857_s21, %s2857_s21, %s2858_s22  }
0x2d29   :  { %2851 = dma.done.wait [#allocation6], 256  }
0x2d2a   :  { %2852 = vsyncadd [#allocation6], 4294967040 }
0x2d2b   :  { %2853 = dma.done.wait [#allocation12], 128  }
0x2d2c   :  { %2854 = vsyncadd [#allocation12], 4294967168 }
0x2d2d   :  { %2097 = vsyncpa [#allocation5], 1 }
0x2d2e   :  { %2098 = vsyncpa [#allocation8], 1 }
0x2d2f   :  { %2099 = vsyncpa [#allocation6], 1 }
0x2d30   :  { %2100 = vsyncpa [#allocation12], 1 }

</bundles_post_ra>
